<compile_context>
chip_gen: v7x
topology: tpu7x:2x2x1
jax: 0.10.0
libtpu: 0.0.40
codegen_flags: <defaults>
</compile_context>

<pallas_src>
import functools
import math

import jax
import jax.numpy as jnp
from jax import lax
from jax.experimental import pallas as pl
from jax.experimental.pallas import tpu as pltpu

NEG_INF = -1e9
LN_EPS = 1e-5

PARAM_ORDER = ("wqkv", "bqkv", "wo", "bo", "ln1w", "ln1b",
               "w1", "b1", "w2", "b2", "ln2w", "ln2b")


# ----------------------------- kernel helpers ------------------------------

def _erf(x):
    # Abramowitz & Stegun 7.1.26 rational approximation (|err| < 1.5e-7).
    # Reciprocal goes to the EUP slot (approx) -> off the VALU critical path.
    a1, a2, a3, a4, a5 = 0.254829592, -0.284496736, 1.421413741, -1.453152027, 1.061405429
    p = 0.3275911
    sgn = jnp.where(x >= 0.0, 1.0, -1.0)
    ax = jnp.abs(x)
    t = pl.reciprocal(1.0 + p * ax, approx=True)
    y = 1.0 - (((((a5 * t + a4) * t + a3) * t + a2) * t + a1) * t) * jnp.exp(-ax * ax)
    return sgn * y


def _gelu_exact(x):
    # exact (erf-based) GELU, matching PyTorch activation='gelu'
    return 0.5 * x * (1.0 + _erf(x * (1.0 / math.sqrt(2.0))))


def _layer_norm(x, w, b):
    mu = jnp.mean(x, axis=-1, keepdims=True)
    xc = x - mu
    var = jnp.mean(xc * xc, axis=-1, keepdims=True)
    return xc * lax.rsqrt(var + LN_EPS) * w + b


# --------------------------------- kernel ----------------------------------

def encoder_layer_kernel(x_ref, bias_ref,
                         wqkv_ref, bqkv_ref, wo_ref, bo_ref,
                         ln1w_ref, ln1b_ref, w1_ref, b1_ref,
                         w2_ref, b2_ref, ln2w_ref, ln2b_ref,
                         out_ref, *, nhead):
    bt, S, D = x_ref.shape                 # batch-tile of activations
    M = bt * S
    Dh = D // nhead
    scale = 1.0 / math.sqrt(Dh)
    bf16 = jnp.bfloat16

    x = x_ref[...].reshape(M, D)           # (M, D) f32; leading-dim merge (free)
    bias = bias_ref[...]                   # (bt, 1, S) f32 additive key-padding bias

    # ---- fused QKV projection: one (M,D)x(D,3D) MXU matmul, bf16 in / f32 acc ----
    qkv = jnp.dot(x.astype(bf16), wqkv_ref[...],
                  preferred_element_type=jnp.float32) + bqkv_ref[...]
    # Cast ONCE to bf16 -- only ever consumed as MXU input below (no f32 scratch).
    qkv3 = qkv.astype(bf16).reshape(bt, S, 3 * D)

    # ---- attention: per-head loop, each head batched over the B_TILE rows ----
    attn = jnp.zeros((M, D), jnp.float32)
    for h in range(nhead):
        q = qkv3[..., h * Dh:(h + 1) * Dh]                      # (bt, S, Dh) bf16
        k = qkv3[..., D + h * Dh:D + (h + 1) * Dh]              # (bt, S, Dh)
        v = qkv3[..., 2 * D + h * Dh:2 * D + (h + 1) * Dh]      # (bt, S, Dh)

        s = jnp.einsum('bqd,bkd->bqk', q, k,
                       preferred_element_type=jnp.float32) * scale + bias
        s = s - jnp.max(s, axis=-1, keepdims=True)
        p = jnp.exp(s)
        p = p * pl.reciprocal(jnp.sum(p, axis=-1, keepdims=True), approx=True)

        o = jnp.einsum('bqk,bkd->bqd', p.astype(bf16), v,
                       preferred_element_type=jnp.float32)       # (bt, S, Dh) f32

        # Accumulated per-head output projection (lane-dense, no masked stores):
        # wo is pre-reshaped to (H, Dh, D) in the wrapper.
        attn = attn + jnp.dot(o.reshape(M, Dh).astype(bf16), wo_ref[h],
                              preferred_element_type=jnp.float32)

    attn = attn + bo_ref[...]

    # ---- residual + LayerNorm 1 (post-norm, norm_first=False) ----
    y = _layer_norm(x + attn, ln1w_ref[...], ln1b_ref[...])

    # ---- feed-forward: (M,D)x(D,Dff) -> exact GELU -> (M,Dff)x(Dff,D) ----
    h1 = jnp.dot(y.astype(bf16), w1_ref[...],
                 preferred_element_type=jnp.float32) + b1_ref[...]
    g = _gelu_exact(h1)
    f = jnp.dot(g.astype(bf16), w2_ref[...],
                preferred_element_type=jnp.float32) + b2_ref[...]

    # ---- residual + LayerNorm 2 ----
    out = _layer_norm(y + f, ln2w_ref[...], ln2b_ref[...])
    out_ref[...] = out.reshape(bt, S, D)


# -------------------------------- wrapper -----------------------------------

def _pick_batch_tile(B, S):
    """Largest divisor of B with B_TILE*S around >=256 sublanes (MXU M-fill)."""
    target = max(1, (256 + S - 1) // S)
    bt = min(B, target)
    while B % bt:
        bt -= 1
    return bt


def encoder_layer_pallas(x, bias, kparams, nhead):
    B, S, D = x.shape
    Dff = kparams["w1"].shape[1]
    assert D % nhead == 0
    bt = _pick_batch_tile(B, S)
    M = bt * S

    in_specs = [
        pl.BlockSpec((bt, S, D), lambda b: (b, 0, 0)),   # activations: bt rows/step
        pl.BlockSpec((bt, 1, S), lambda b: (b, 0, 0)),   # additive key-padding bias
    ]
    args = [x, bias]
    for name in PARAM_ORDER:
        w = kparams[name]
        # Constant block index across the grid -> weights stay resident in VMEM.
        in_specs.append(pl.BlockSpec(w.shape, lambda b, n=w.ndim: (0,) * n))
        args.append(w)

    # Explicit VMEM budget: double-buffered weights + double-buffered activation
    # blocks + headroom for f32 in-kernel values; clamped to 64 MiB (v7x physical).
    w_bytes = sum(int(v.size) * v.dtype.itemsize for v in kparams.values())
    act_bytes = 2 * 4 * (2 * M * D + bt * S)
    inter_bytes = 4 * M * (3 * D + 2 * Dff + 8 * D)
    need = 2 * w_bytes + act_bytes + inter_bytes
    vmem_limit = int(min(64 << 20, max(32 << 20, 2 * need)))

    flops = int(2 * B * S * D * (3 * D + D + 2 * Dff) + 4 * B * S * S * D)
    transcendentals = int(B * nhead * S * S + B * S * Dff)
    bytes_accessed = int((2 * B * S * D + B * S) * 4 + w_bytes)

    return pl.pallas_call(
        functools.partial(encoder_layer_kernel, nhead=nhead),
        out_shape=jax.ShapeDtypeStruct((B, S, D), jnp.float32),
        grid=(B // bt,),
        in_specs=in_specs,
        out_specs=pl.BlockSpec((bt, S, D), lambda b: (b, 0, 0)),
        compiler_params=pltpu.CompilerParams(
            dimension_semantics=("parallel",),          # batch-tile axis -> both v7x TCs
            vmem_limit_bytes=vmem_limit),
        cost_estimate=pl.CostEstimate(flops=flops,
                                      transcendentals=transcendentals,
                                      bytes_accessed=bytes_accessed),
    )(*args)


def token_encoder_forward(src, mask, kernel_layer_params, nhead):
    """src: (B,S,D) f32; mask: (B,S) bool, True == padded key (ignored)."""
    bias = jnp.where(mask[:, None, :], NEG_INF, 0.0).astype(jnp.float32)   # (B,1,S)
    x = src
    for p in kernel_layer_params:
        x = encoder_layer_pallas(x, bias, p, nhead)
    return x


# ------------------------ deterministic parameter init ----------------------

def init_torch_layer_params(key, D, H, Dff):
    """Parameters in PyTorch nn.TransformerEncoderLayer layout, f32."""
    ks = jax.random.split(key, 12)

    def rn(k, shape, scl):
        return (scl * jax.random.normal(k, shape)).astype(jnp.float32)

    return dict(
        in_proj_weight=rn(ks[0], (3 * D, D), 1.0 / math.sqrt(D)),
        in_proj_bias=rn(ks[1], (3 * D,), 0.02),
        out_proj_weight=rn(ks[2], (D, D), 1.0 / math.sqrt(D)),
        out_proj_bias=rn(ks[3], (D,), 0.02),
        linear1_weight=rn(ks[4], (Dff, D), 1.0 / math.sqrt(D)),
        linear1_bias=rn(ks[5], (Dff,), 0.02),
        linear2_weight=rn(ks[6], (D, Dff), 1.0 / math.sqrt(Dff)),
        linear2_bias=rn(ks[7], (D,), 0.02),
        ln1_weight=1.0 + rn(ks[8], (D,), 0.05),
        ln1_bias=rn(ks[9], (D,), 0.05),
        ln2_weight=1.0 + rn(ks[10], (D,), 0.05),
        ln2_bias=rn(ks[11], (D,), 0.05),
    )


def to_kernel_params(p, nhead):
    """PyTorch layout -> lane-dense, pre-transposed kernel layout.

    Matmul weights stored as bf16 (MXU inputs); the output projection is stored
    per-head as (H, Dh, D) so the kernel accumulates attn += o_h @ wo[h] with
    lane-dense matmuls (no lane-offset slicing/stores). Biases and LayerNorm
    params stay f32 (all elementwise math runs in f32 -- v5e-safe).
    """
    f32, b16 = jnp.float32, jnp.bfloat16
    D = p["out_proj_weight"].shape[0]
    Dh = D // nhead
    return dict(
        wqkv=p["in_proj_weight"].T.astype(b16),                      # (D, 3D)
        bqkv=p["in_proj_bias"].reshape(1, -1).astype(f32),
        wo=p["out_proj_weight"].T.reshape(nhead, Dh, D).astype(b16),  # (H, Dh, D)
        bo=p["out_proj_bias"].reshape(1, -1).astype(f32),
        ln1w=p["ln1_weight"].reshape(1, -1).astype(f32),
        ln1b=p["ln1_bias"].reshape(1, -1).astype(f32),
        w1=p["linear1_weight"].T.astype(b16),                        # (D, Dff)
        b1=p["linear1_bias"].reshape(1, -1).astype(f32),
        w2=p["linear2_weight"].T.astype(b16),                        # (Dff, D)
        b2=p["linear2_bias"].reshape(1, -1).astype(f32),
        ln2w=p["ln2_weight"].reshape(1, -1).astype(f32),
        ln2b=p["ln2_bias"].reshape(1, -1).astype(f32),
    )


# ------------------------------ pure-JAX reference ---------------------------

def _ln_ref(x, w, b):
    mu = jnp.mean(x, axis=-1, keepdims=True)
    xc = x - mu
    var = jnp.mean(xc * xc, axis=-1, keepdims=True)
    return xc / jnp.sqrt(var + LN_EPS) * w + b


def ref_forward(src, mask, torch_layers, nhead, matmul_dtype=None):
    """Reference with PyTorch parameter layout.

    matmul_dtype=None     -> f32 matmuls at HIGHEST precision (PyTorch parity).
    matmul_dtype=bfloat16 -> mirrors the kernel's bf16-in / f32-accumulate MXU path.
    """
    prec = "highest" if matmul_dtype is None else None

    def mm(eq, a, b):
        if matmul_dtype is not None:
            a, b = a.astype(matmul_dtype), b.astype(matmul_dtype)
        return jnp.einsum(eq, a, b, precision=prec, preferred_element_type=jnp.float32)

    bias = jnp.where(mask[:, None, :], NEG_INF, 0.0)
    x = src
    for p in torch_layers:
        B, S, D = x.shape
        Dh = D // nhead
        qkv = mm("bsd,ed->bse", x, p["in_proj_weight"]) + p["in_proj_bias"]
        q, k, v = qkv[..., :D], qkv[..., D:2 * D], qkv[..., 2 * D:]
        split = lambda t: t.reshape(B, S, nhead, Dh).transpose(0, 2, 1, 3)
        qh, kh, vh = split(q), split(k), split(v)
        s = mm("bhqe,bhke->bhqk", qh, kh) / math.sqrt(Dh) + bias[:, None, :, :]
        w = jax.nn.softmax(s, axis=-1)
        o = mm("bhqk,bhke->bhqe", w, vh).transpose(0, 2, 1, 3).reshape(B, S, D)
        attn = mm("bse,de->bsd", o, p["out_proj_weight"]) + p["out_proj_bias"]
        y = _ln_ref(x + attn, p["ln1_weight"], p["ln1_bias"])
        h1 = mm("bsd,fd->bsf", y, p["linear1_weight"]) + p["linear1_bias"]
        g = jax.nn.gelu(h1, approximate=False)
        f = mm("bsf,df->bsd", g, p["linear2_weight"]) + p["linear2_bias"]
        x = _ln_ref(y + f, p["ln2_weight"], p["ln2_bias"])
    return x


# ----------------------------------- main ------------------------------------

if __name__ == "__main__":
    B, S, D, H, DFF, NUM_LAYERS = 2, 8, 32, 4, 64, 2

    key = jax.random.PRNGKey(0)
    k_src, k_par = jax.random.split(key)
    src = jax.random.normal(k_src, (B, S, D), dtype=jnp.float32)
    # True == padded key (ignored), like src_key_padding_mask in PyTorch.
    mask = jnp.zeros((B, S), dtype=bool).at[1, S - 2:].set(True)

    layer_keys = jax.random.split(k_par, NUM_LAYERS)
    torch_layers = [init_torch_layer_params(k, D, H, DFF) for k in layer_keys]
    kernel_layers = [to_kernel_params(p, H) for p in torch_layers]

    out = jax.block_until_ready(token_encoder_forward(src, mask, kernel_layers, H))
    assert out.shape == (B, S, D)
    assert bool(jnp.all(jnp.isfinite(out)))

    # Primary check: reference mirroring the kernel's bf16 MXU precision; residual
    # differences come only from EUP approx reciprocals (softmax/erf) and summation order.
    ref_mxu = ref_forward(src, mask, torch_layers, H, matmul_dtype=jnp.bfloat16)
    err_mxu = float(jnp.max(jnp.abs(out - ref_mxu)))
    assert err_mxu < 5e-2, f"mismatch vs bf16-matched reference: {err_mxu}"

    # Secondary sanity check: strict-f32 (HIGHEST) PyTorch-parity reference; tolerance
    # is loose because the kernel intentionally runs bf16-in/f32-accumulate matmuls.
    ref_f32 = ref_forward(src, mask, torch_layers, H)
    err_f32 = float(jnp.max(jnp.abs(out - ref_f32)))
    assert err_f32 < 2e-1, f"mismatch vs f32 reference: {err_f32}"

    print("KERNEL_OK")
</pallas_src>

<mosaic_0001>
module attributes {stable_mosaic.version = 11 : i64} {
  func.func @encoder_layer_kernel(%arg0: i32, %arg1: memref<2x8x32xf32, #tpu.memory_space<vmem>>, %arg2: memref<2x1x8xf32, #tpu.memory_space<vmem>>, %arg3: memref<32x96xbf16, #tpu.memory_space<vmem>>, %arg4: memref<1x96xf32, #tpu.memory_space<vmem>>, %arg5: memref<4x8x32xbf16, #tpu.memory_space<vmem>>, %arg6: memref<1x32xf32, #tpu.memory_space<vmem>>, %arg7: memref<1x32xf32, #tpu.memory_space<vmem>>, %arg8: memref<1x32xf32, #tpu.memory_space<vmem>>, %arg9: memref<32x64xbf16, #tpu.memory_space<vmem>>, %arg10: memref<1x64xf32, #tpu.memory_space<vmem>>, %arg11: memref<64x32xbf16, #tpu.memory_space<vmem>>, %arg12: memref<1x32xf32, #tpu.memory_space<vmem>>, %arg13: memref<1x32xf32, #tpu.memory_space<vmem>>, %arg14: memref<1x32xf32, #tpu.memory_space<vmem>>, %arg15: memref<2x8x32xf32, #tpu.memory_space<vmem>>) attributes {dimension_semantics = [#tpu.dimension_semantics<parallel>], iteration_bounds = array<i64: 1>, scalar_prefetch = 0 : i64, scratch_operands = 0 : i64, tpu.core_type = #tpu.core_type<tc>, window_params = [{transform_indices = @transform_0, window_bounds = array<i64: 2, 8, 32>}, {transform_indices = @transform_1, window_bounds = array<i64: 2, 1, 8>}, {pipeline_mode = #tpu.pipeline_mode<synchronous>, transform_indices = @transform_2, window_bounds = array<i64: 32, 96>}, {pipeline_mode = #tpu.pipeline_mode<synchronous>, transform_indices = @transform_3, window_bounds = array<i64: 1, 96>}, {pipeline_mode = #tpu.pipeline_mode<synchronous>, transform_indices = @transform_4, window_bounds = array<i64: 4, 8, 32>}, {pipeline_mode = #tpu.pipeline_mode<synchronous>, transform_indices = @transform_5, window_bounds = array<i64: 1, 32>}, {pipeline_mode = #tpu.pipeline_mode<synchronous>, transform_indices = @transform_6, window_bounds = array<i64: 1, 32>}, {pipeline_mode = #tpu.pipeline_mode<synchronous>, transform_indices = @transform_7, window_bounds = array<i64: 1, 32>}, {pipeline_mode = #tpu.pipeline_mode<synchronous>, transform_indices = @transform_8, window_bounds = array<i64: 32, 64>}, {pipeline_mode = #tpu.pipeline_mode<synchronous>, transform_indices = @transform_9, window_bounds = array<i64: 1, 64>}, {pipeline_mode = #tpu.pipeline_mode<synchronous>, transform_indices = @transform_10, window_bounds = array<i64: 64, 32>}, {pipeline_mode = #tpu.pipeline_mode<synchronous>, transform_indices = @transform_11, window_bounds = array<i64: 1, 32>}, {pipeline_mode = #tpu.pipeline_mode<synchronous>, transform_indices = @transform_12, window_bounds = array<i64: 1, 32>}, {pipeline_mode = #tpu.pipeline_mode<synchronous>, transform_indices = @transform_13, window_bounds = array<i64: 1, 32>}, {transform_indices = @transform_14, window_bounds = array<i64: 2, 8, 32>}]} {
    %c0 = arith.constant 0 : index
    %c0_0 = arith.constant 0 : index
    %c0_1 = arith.constant 0 : index
    %0 = vector.load %arg1[%c0, %c0_0, %c0_1] : memref<2x8x32xf32, #tpu.memory_space<vmem>>, vector<2x8x32xf32>
    %1 = vector.shape_cast %0 : vector<2x8x32xf32> to vector<16x32xf32>
    %c0_2 = arith.constant 0 : index
    %c0_3 = arith.constant 0 : index
    %c0_4 = arith.constant 0 : index
    %2 = vector.load %arg2[%c0_2, %c0_3, %c0_4] : memref<2x1x8xf32, #tpu.memory_space<vmem>>, vector<2x1x8xf32>
    %3 = arith.truncf %1 : vector<16x32xf32> to vector<16x32xbf16>
    %c0_5 = arith.constant 0 : index
    %c0_6 = arith.constant 0 : index
    %4 = vector.load %arg3[%c0_5, %c0_6] : memref<32x96xbf16, #tpu.memory_space<vmem>>, vector<32x96xbf16>
    %cst = arith.constant dense<0.000000e+00> : vector<16x96xf32>
    %5 = tpu.matmul %3, %4, %cst {dimension_numbers = #tpu.dot_dimension_numbers<[1], [0], [0], [1], [0, 0, 1, 1], [], []>} : vector<16x32xbf16>, vector<32x96xbf16>, vector<16x96xf32> -> vector<16x96xf32>
    %c0_7 = arith.constant 0 : index
    %c0_8 = arith.constant 0 : index
    %6 = vector.load %arg4[%c0_7, %c0_8] : memref<1x96xf32, #tpu.memory_space<vmem>>, vector<1x96xf32>
    %7 = vector.broadcast %6 : vector<1x96xf32> to vector<16x96xf32>
    %8 = arith.addf %5, %7 : vector<16x96xf32>
    %9 = arith.truncf %8 : vector<16x96xf32> to vector<16x96xbf16>
    %10 = vector.shape_cast %9 : vector<16x96xbf16> to vector<2x8x96xbf16>
    %cst_9 = arith.constant 0.000000e+00 : f32
    %11 = vector.broadcast %cst_9 : f32 to vector<16x32xf32>
    %12 = vector.extract_strided_slice %10 {offsets = [0, 0, 0], sizes = [2, 8, 8], strides = [1, 1, 1]} : vector<2x8x96xbf16> to vector<2x8x8xbf16>
    %13 = vector.extract_strided_slice %10 {offsets = [0, 0, 32], sizes = [2, 8, 8], strides = [1, 1, 1]} : vector<2x8x96xbf16> to vector<2x8x8xbf16>
    %14 = vector.extract_strided_slice %10 {offsets = [0, 0, 64], sizes = [2, 8, 8], strides = [1, 1, 1]} : vector<2x8x96xbf16> to vector<2x8x8xbf16>
    "tpu.trace_start"() <{level = 10 : i32, message = "bqd,bkd->bqk"}> : () -> ()
    %cst_10 = arith.constant dense<0.000000e+00> : vector<2x8x8xf32>
    %15 = tpu.matmul %12, %13, %cst_10 {dimension_numbers = #tpu.dot_dimension_numbers<[2], [2], [1], [1], [0, 0, 0, 1, 1, 1], [0], [0]>} : vector<2x8x8xbf16>, vector<2x8x8xbf16>, vector<2x8x8xf32> -> vector<2x8x8xf32>
    "tpu.trace_stop"() : () -> ()
    %cst_11 = arith.constant 0.353553385 : f32
    %16 = vector.broadcast %cst_11 : f32 to vector<2x8x8xf32>
    %17 = arith.mulf %15, %16 : vector<2x8x8xf32>
    %18 = vector.broadcast %2 : vector<2x1x8xf32> to vector<2x8x8xf32>
    %19 = arith.addf %17, %18 : vector<2x8x8xf32>
    %cst_12 = arith.constant dense<0xFF800000> : vector<2x8xf32>
    %20 = vector.multi_reduction <maximumf>, %19, %cst_12 [2] : vector<2x8x8xf32> to vector<2x8xf32>
    %21 = vector.shape_cast %20 : vector<2x8xf32> to vector<2x8x1xf32>
    %22 = vector.broadcast %21 : vector<2x8x1xf32> to vector<2x8x8xf32>
    %23 = arith.subf %19, %22 : vector<2x8x8xf32>
    %24 = math.exp %23 : vector<2x8x8xf32>
    %cst_13 = arith.constant dense<0.000000e+00> : vector<2x8xf32>
    %25 = vector.multi_reduction <add>, %24, %cst_13 [2] : vector<2x8x8xf32> to vector<2x8xf32>
    %26 = vector.shape_cast %25 : vector<2x8xf32> to vector<2x8x1xf32>
    %27 = tpu.reciprocal %26 {approx = true} : vector<2x8x1xf32> -> vector<2x8x1xf32>
    %28 = vector.broadcast %27 : vector<2x8x1xf32> to vector<2x8x8xf32>
    %29 = arith.mulf %24, %28 : vector<2x8x8xf32>
    %30 = arith.truncf %29 : vector<2x8x8xf32> to vector<2x8x8xbf16>
    "tpu.trace_start"() <{level = 10 : i32, message = "bqk,bkd->bqd"}> : () -> ()
    %cst_14 = arith.constant dense<0.000000e+00> : vector<2x8x8xf32>
    %31 = tpu.matmul %30, %14, %cst_14 {dimension_numbers = #tpu.dot_dimension_numbers<[2], [1], [1], [2], [0, 0, 0, 1, 1, 2], [0], [0]>} : vector<2x8x8xbf16>, vector<2x8x8xbf16>, vector<2x8x8xf32> -> vector<2x8x8xf32>
    "tpu.trace_stop"() : () -> ()
    %32 = vector.shape_cast %31 : vector<2x8x8xf32> to vector<16x8xf32>
    %33 = arith.truncf %32 : vector<16x8xf32> to vector<16x8xbf16>
    %c0_15 = arith.constant 0 : index
    %c0_16 = arith.constant 0 : index
    %c0_17 = arith.constant 0 : index
    %34 = vector.load %arg5[%c0_15, %c0_16, %c0_17] : memref<4x8x32xbf16, #tpu.memory_space<vmem>>, vector<1x8x32xbf16>
    %35 = vector.shape_cast %34 : vector<1x8x32xbf16> to vector<8x32xbf16>
    %cst_18 = arith.constant dense<0.000000e+00> : vector<16x32xf32>
    %36 = tpu.matmul %33, %35, %cst_18 {dimension_numbers = #tpu.dot_dimension_numbers<[1], [0], [0], [1], [0, 0, 1, 1], [], []>} : vector<16x8xbf16>, vector<8x32xbf16>, vector<16x32xf32> -> vector<16x32xf32>
    %37 = arith.addf %11, %36 : vector<16x32xf32>
    %38 = vector.extract_strided_slice %10 {offsets = [0, 0, 8], sizes = [2, 8, 8], strides = [1, 1, 1]} : vector<2x8x96xbf16> to vector<2x8x8xbf16>
    %39 = vector.extract_strided_slice %10 {offsets = [0, 0, 40], sizes = [2, 8, 8], strides = [1, 1, 1]} : vector<2x8x96xbf16> to vector<2x8x8xbf16>
    %40 = vector.extract_strided_slice %10 {offsets = [0, 0, 72], sizes = [2, 8, 8], strides = [1, 1, 1]} : vector<2x8x96xbf16> to vector<2x8x8xbf16>
    "tpu.trace_start"() <{level = 10 : i32, message = "bqd,bkd->bqk"}> : () -> ()
    %cst_19 = arith.constant dense<0.000000e+00> : vector<2x8x8xf32>
    %41 = tpu.matmul %38, %39, %cst_19 {dimension_numbers = #tpu.dot_dimension_numbers<[2], [2], [1], [1], [0, 0, 0, 1, 1, 1], [0], [0]>} : vector<2x8x8xbf16>, vector<2x8x8xbf16>, vector<2x8x8xf32> -> vector<2x8x8xf32>
    "tpu.trace_stop"() : () -> ()
    %cst_20 = arith.constant 0.353553385 : f32
    %42 = vector.broadcast %cst_20 : f32 to vector<2x8x8xf32>
    %43 = arith.mulf %41, %42 : vector<2x8x8xf32>
    %44 = vector.broadcast %2 : vector<2x1x8xf32> to vector<2x8x8xf32>
    %45 = arith.addf %43, %44 : vector<2x8x8xf32>
    %cst_21 = arith.constant dense<0xFF800000> : vector<2x8xf32>
    %46 = vector.multi_reduction <maximumf>, %45, %cst_21 [2] : vector<2x8x8xf32> to vector<2x8xf32>
    %47 = vector.shape_cast %46 : vector<2x8xf32> to vector<2x8x1xf32>
    %48 = vector.broadcast %47 : vector<2x8x1xf32> to vector<2x8x8xf32>
    %49 = arith.subf %45, %48 : vector<2x8x8xf32>
    %50 = math.exp %49 : vector<2x8x8xf32>
    %cst_22 = arith.constant dense<0.000000e+00> : vector<2x8xf32>
    %51 = vector.multi_reduction <add>, %50, %cst_22 [2] : vector<2x8x8xf32> to vector<2x8xf32>
    %52 = vector.shape_cast %51 : vector<2x8xf32> to vector<2x8x1xf32>
    %53 = tpu.reciprocal %52 {approx = true} : vector<2x8x1xf32> -> vector<2x8x1xf32>
    %54 = vector.broadcast %53 : vector<2x8x1xf32> to vector<2x8x8xf32>
    %55 = arith.mulf %50, %54 : vector<2x8x8xf32>
    %56 = arith.truncf %55 : vector<2x8x8xf32> to vector<2x8x8xbf16>
    "tpu.trace_start"() <{level = 10 : i32, message = "bqk,bkd->bqd"}> : () -> ()
    %cst_23 = arith.constant dense<0.000000e+00> : vector<2x8x8xf32>
    %57 = tpu.matmul %56, %40, %cst_23 {dimension_numbers = #tpu.dot_dimension_numbers<[2], [1], [1], [2], [0, 0, 0, 1, 1, 2], [0], [0]>} : vector<2x8x8xbf16>, vector<2x8x8xbf16>, vector<2x8x8xf32> -> vector<2x8x8xf32>
    "tpu.trace_stop"() : () -> ()
    %58 = vector.shape_cast %57 : vector<2x8x8xf32> to vector<16x8xf32>
    %59 = arith.truncf %58 : vector<16x8xf32> to vector<16x8xbf16>
    %c1 = arith.constant 1 : index
    %c0_24 = arith.constant 0 : index
    %c0_25 = arith.constant 0 : index
    %60 = vector.load %arg5[%c1, %c0_24, %c0_25] : memref<4x8x32xbf16, #tpu.memory_space<vmem>>, vector<1x8x32xbf16>
    %61 = vector.shape_cast %60 : vector<1x8x32xbf16> to vector<8x32xbf16>
    %cst_26 = arith.constant dense<0.000000e+00> : vector<16x32xf32>
    %62 = tpu.matmul %59, %61, %cst_26 {dimension_numbers = #tpu.dot_dimension_numbers<[1], [0], [0], [1], [0, 0, 1, 1], [], []>} : vector<16x8xbf16>, vector<8x32xbf16>, vector<16x32xf32> -> vector<16x32xf32>
    %63 = arith.addf %37, %62 : vector<16x32xf32>
    %64 = vector.extract_strided_slice %10 {offsets = [0, 0, 16], sizes = [2, 8, 8], strides = [1, 1, 1]} : vector<2x8x96xbf16> to vector<2x8x8xbf16>
    %65 = vector.extract_strided_slice %10 {offsets = [0, 0, 48], sizes = [2, 8, 8], strides = [1, 1, 1]} : vector<2x8x96xbf16> to vector<2x8x8xbf16>
    %66 = vector.extract_strided_slice %10 {offsets = [0, 0, 80], sizes = [2, 8, 8], strides = [1, 1, 1]} : vector<2x8x96xbf16> to vector<2x8x8xbf16>
    "tpu.trace_start"() <{level = 10 : i32, message = "bqd,bkd->bqk"}> : () -> ()
    %cst_27 = arith.constant dense<0.000000e+00> : vector<2x8x8xf32>
    %67 = tpu.matmul %64, %65, %cst_27 {dimension_numbers = #tpu.dot_dimension_numbers<[2], [2], [1], [1], [0, 0, 0, 1, 1, 1], [0], [0]>} : vector<2x8x8xbf16>, vector<2x8x8xbf16>, vector<2x8x8xf32> -> vector<2x8x8xf32>
    "tpu.trace_stop"() : () -> ()
    %cst_28 = arith.constant 0.353553385 : f32
    %68 = vector.broadcast %cst_28 : f32 to vector<2x8x8xf32>
    %69 = arith.mulf %67, %68 : vector<2x8x8xf32>
    %70 = vector.broadcast %2 : vector<2x1x8xf32> to vector<2x8x8xf32>
    %71 = arith.addf %69, %70 : vector<2x8x8xf32>
    %cst_29 = arith.constant dense<0xFF800000> : vector<2x8xf32>
    %72 = vector.multi_reduction <maximumf>, %71, %cst_29 [2] : vector<2x8x8xf32> to vector<2x8xf32>
    %73 = vector.shape_cast %72 : vector<2x8xf32> to vector<2x8x1xf32>
    %74 = vector.broadcast %73 : vector<2x8x1xf32> to vector<2x8x8xf32>
    %75 = arith.subf %71, %74 : vector<2x8x8xf32>
    %76 = math.exp %75 : vector<2x8x8xf32>
    %cst_30 = arith.constant dense<0.000000e+00> : vector<2x8xf32>
    %77 = vector.multi_reduction <add>, %76, %cst_30 [2] : vector<2x8x8xf32> to vector<2x8xf32>
    %78 = vector.shape_cast %77 : vector<2x8xf32> to vector<2x8x1xf32>
    %79 = tpu.reciprocal %78 {approx = true} : vector<2x8x1xf32> -> vector<2x8x1xf32>
    %80 = vector.broadcast %79 : vector<2x8x1xf32> to vector<2x8x8xf32>
    %81 = arith.mulf %76, %80 : vector<2x8x8xf32>
    %82 = arith.truncf %81 : vector<2x8x8xf32> to vector<2x8x8xbf16>
    "tpu.trace_start"() <{level = 10 : i32, message = "bqk,bkd->bqd"}> : () -> ()
    %cst_31 = arith.constant dense<0.000000e+00> : vector<2x8x8xf32>
    %83 = tpu.matmul %82, %66, %cst_31 {dimension_numbers = #tpu.dot_dimension_numbers<[2], [1], [1], [2], [0, 0, 0, 1, 1, 2], [0], [0]>} : vector<2x8x8xbf16>, vector<2x8x8xbf16>, vector<2x8x8xf32> -> vector<2x8x8xf32>
    "tpu.trace_stop"() : () -> ()
    %84 = vector.shape_cast %83 : vector<2x8x8xf32> to vector<16x8xf32>
    %85 = arith.truncf %84 : vector<16x8xf32> to vector<16x8xbf16>
    %c2 = arith.constant 2 : index
    %c0_32 = arith.constant 0 : index
    %c0_33 = arith.constant 0 : index
    %86 = vector.load %arg5[%c2, %c0_32, %c0_33] : memref<4x8x32xbf16, #tpu.memory_space<vmem>>, vector<1x8x32xbf16>
    %87 = vector.shape_cast %86 : vector<1x8x32xbf16> to vector<8x32xbf16>
    %cst_34 = arith.constant dense<0.000000e+00> : vector<16x32xf32>
    %88 = tpu.matmul %85, %87, %cst_34 {dimension_numbers = #tpu.dot_dimension_numbers<[1], [0], [0], [1], [0, 0, 1, 1], [], []>} : vector<16x8xbf16>, vector<8x32xbf16>, vector<16x32xf32> -> vector<16x32xf32>
    %89 = arith.addf %63, %88 : vector<16x32xf32>
    %90 = vector.extract_strided_slice %10 {offsets = [0, 0, 24], sizes = [2, 8, 8], strides = [1, 1, 1]} : vector<2x8x96xbf16> to vector<2x8x8xbf16>
    %91 = vector.extract_strided_slice %10 {offsets = [0, 0, 56], sizes = [2, 8, 8], strides = [1, 1, 1]} : vector<2x8x96xbf16> to vector<2x8x8xbf16>
    %92 = vector.extract_strided_slice %10 {offsets = [0, 0, 88], sizes = [2, 8, 8], strides = [1, 1, 1]} : vector<2x8x96xbf16> to vector<2x8x8xbf16>
    "tpu.trace_start"() <{level = 10 : i32, message = "bqd,bkd->bqk"}> : () -> ()
    %cst_35 = arith.constant dense<0.000000e+00> : vector<2x8x8xf32>
    %93 = tpu.matmul %90, %91, %cst_35 {dimension_numbers = #tpu.dot_dimension_numbers<[2], [2], [1], [1], [0, 0, 0, 1, 1, 1], [0], [0]>} : vector<2x8x8xbf16>, vector<2x8x8xbf16>, vector<2x8x8xf32> -> vector<2x8x8xf32>
    "tpu.trace_stop"() : () -> ()
    %cst_36 = arith.constant 0.353553385 : f32
    %94 = vector.broadcast %cst_36 : f32 to vector<2x8x8xf32>
    %95 = arith.mulf %93, %94 : vector<2x8x8xf32>
    %96 = vector.broadcast %2 : vector<2x1x8xf32> to vector<2x8x8xf32>
    %97 = arith.addf %95, %96 : vector<2x8x8xf32>
    %cst_37 = arith.constant dense<0xFF800000> : vector<2x8xf32>
    %98 = vector.multi_reduction <maximumf>, %97, %cst_37 [2] : vector<2x8x8xf32> to vector<2x8xf32>
    %99 = vector.shape_cast %98 : vector<2x8xf32> to vector<2x8x1xf32>
    %100 = vector.broadcast %99 : vector<2x8x1xf32> to vector<2x8x8xf32>
    %101 = arith.subf %97, %100 : vector<2x8x8xf32>
    %102 = math.exp %101 : vector<2x8x8xf32>
    %cst_38 = arith.constant dense<0.000000e+00> : vector<2x8xf32>
    %103 = vector.multi_reduction <add>, %102, %cst_38 [2] : vector<2x8x8xf32> to vector<2x8xf32>
    %104 = vector.shape_cast %103 : vector<2x8xf32> to vector<2x8x1xf32>
    %105 = tpu.reciprocal %104 {approx = true} : vector<2x8x1xf32> -> vector<2x8x1xf32>
    %106 = vector.broadcast %105 : vector<2x8x1xf32> to vector<2x8x8xf32>
    %107 = arith.mulf %102, %106 : vector<2x8x8xf32>
    %108 = arith.truncf %107 : vector<2x8x8xf32> to vector<2x8x8xbf16>
    "tpu.trace_start"() <{level = 10 : i32, message = "bqk,bkd->bqd"}> : () -> ()
    %cst_39 = arith.constant dense<0.000000e+00> : vector<2x8x8xf32>
    %109 = tpu.matmul %108, %92, %cst_39 {dimension_numbers = #tpu.dot_dimension_numbers<[2], [1], [1], [2], [0, 0, 0, 1, 1, 2], [0], [0]>} : vector<2x8x8xbf16>, vector<2x8x8xbf16>, vector<2x8x8xf32> -> vector<2x8x8xf32>
    "tpu.trace_stop"() : () -> ()
    %110 = vector.shape_cast %109 : vector<2x8x8xf32> to vector<16x8xf32>
    %111 = arith.truncf %110 : vector<16x8xf32> to vector<16x8xbf16>
    %c3 = arith.constant 3 : index
    %c0_40 = arith.constant 0 : index
    %c0_41 = arith.constant 0 : index
    %112 = vector.load %arg5[%c3, %c0_40, %c0_41] : memref<4x8x32xbf16, #tpu.memory_space<vmem>>, vector<1x8x32xbf16>
    %113 = vector.shape_cast %112 : vector<1x8x32xbf16> to vector<8x32xbf16>
    %cst_42 = arith.constant dense<0.000000e+00> : vector<16x32xf32>
    %114 = tpu.matmul %111, %113, %cst_42 {dimension_numbers = #tpu.dot_dimension_numbers<[1], [0], [0], [1], [0, 0, 1, 1], [], []>} : vector<16x8xbf16>, vector<8x32xbf16>, vector<16x32xf32> -> vector<16x32xf32>
    %115 = arith.addf %89, %114 : vector<16x32xf32>
    %c0_43 = arith.constant 0 : index
    %c0_44 = arith.constant 0 : index
    %116 = vector.load %arg6[%c0_43, %c0_44] : memref<1x32xf32, #tpu.memory_space<vmem>>, vector<1x32xf32>
    %117 = vector.broadcast %116 : vector<1x32xf32> to vector<16x32xf32>
    %118 = arith.addf %115, %117 : vector<16x32xf32>
    %119 = arith.addf %1, %118 : vector<16x32xf32>
    %c0_45 = arith.constant 0 : index
    %c0_46 = arith.constant 0 : index
    %120 = vector.load %arg7[%c0_45, %c0_46] : memref<1x32xf32, #tpu.memory_space<vmem>>, vector<1x32xf32>
    %c0_47 = arith.constant 0 : index
    %c0_48 = arith.constant 0 : index
    %121 = vector.load %arg8[%c0_47, %c0_48] : memref<1x32xf32, #tpu.memory_space<vmem>>, vector<1x32xf32>
    %cst_49 = arith.constant dense<0.000000e+00> : vector<16xf32>
    %122 = vector.multi_reduction <add>, %119, %cst_49 [1] : vector<16x32xf32> to vector<16xf32>
    %123 = vector.shape_cast %122 : vector<16xf32> to vector<16x1xf32>
    %cst_50 = arith.constant 3.200000e+01 : f32
    %124 = vector.broadcast %cst_50 : f32 to vector<16x1xf32>
    %125 = arith.divf %123, %124 : vector<16x1xf32>
    %126 = vector.broadcast %125 : vector<16x1xf32> to vector<16x32xf32>
    %127 = arith.subf %119, %126 : vector<16x32xf32>
    %128 = arith.mulf %127, %127 : vector<16x32xf32>
    %cst_51 = arith.constant dense<0.000000e+00> : vector<16xf32>
    %129 = vector.multi_reduction <add>, %128, %cst_51 [1] : vector<16x32xf32> to vector<16xf32>
    %130 = vector.shape_cast %129 : vector<16xf32> to vector<16x1xf32>
    %cst_52 = arith.constant 3.200000e+01 : f32
    %131 = vector.broadcast %cst_52 : f32 to vector<16x1xf32>
    %132 = arith.divf %130, %131 : vector<16x1xf32>
    %cst_53 = arith.constant 9.99999974E-6 : f32
    %133 = vector.broadcast %cst_53 : f32 to vector<16x1xf32>
    %134 = arith.addf %132, %133 : vector<16x1xf32>
    %135 = math.rsqrt %134 : vector<16x1xf32>
    %136 = vector.broadcast %135 : vector<16x1xf32> to vector<16x32xf32>
    %137 = arith.mulf %127, %136 : vector<16x32xf32>
    %138 = vector.broadcast %120 : vector<1x32xf32> to vector<16x32xf32>
    %139 = arith.mulf %137, %138 : vector<16x32xf32>
    %140 = vector.broadcast %121 : vector<1x32xf32> to vector<16x32xf32>
    %141 = arith.addf %139, %140 : vector<16x32xf32>
    %142 = arith.truncf %141 : vector<16x32xf32> to vector<16x32xbf16>
    %c0_54 = arith.constant 0 : index
    %c0_55 = arith.constant 0 : index
    %143 = vector.load %arg9[%c0_54, %c0_55] : memref<32x64xbf16, #tpu.memory_space<vmem>>, vector<32x64xbf16>
    %cst_56 = arith.constant dense<0.000000e+00> : vector<16x64xf32>
    %144 = tpu.matmul %142, %143, %cst_56 {dimension_numbers = #tpu.dot_dimension_numbers<[1], [0], [0], [1], [0, 0, 1, 1], [], []>} : vector<16x32xbf16>, vector<32x64xbf16>, vector<16x64xf32> -> vector<16x64xf32>
    %c0_57 = arith.constant 0 : index
    %c0_58 = arith.constant 0 : index
    %145 = vector.load %arg10[%c0_57, %c0_58] : memref<1x64xf32, #tpu.memory_space<vmem>>, vector<1x64xf32>
    %146 = vector.broadcast %145 : vector<1x64xf32> to vector<16x64xf32>
    %147 = arith.addf %144, %146 : vector<16x64xf32>
    %cst_59 = arith.constant 5.000000e-01 : f32
    %148 = vector.broadcast %cst_59 : f32 to vector<16x64xf32>
    %149 = arith.mulf %148, %147 : vector<16x64xf32>
    %cst_60 = arith.constant 0.707106769 : f32
    %150 = vector.broadcast %cst_60 : f32 to vector<16x64xf32>
    %151 = arith.mulf %147, %150 : vector<16x64xf32>
    %cst_61 = arith.constant 0.000000e+00 : f32
    %152 = vector.broadcast %cst_61 : f32 to vector<16x64xf32>
    %153 = arith.cmpf oge, %151, %152 : vector<16x64xf32>
    %cst_62 = arith.constant 1.000000e+00 : f32
    %cst_63 = arith.constant -1.000000e+00 : f32
    %154 = vector.broadcast %cst_62 : f32 to vector<16x64xf32>
    %155 = vector.broadcast %cst_63 : f32 to vector<16x64xf32>
    %156 = arith.select %153, %154, %155 : vector<16x64xi1>, vector<16x64xf32>
    %157 = math.absf %151 : vector<16x64xf32>
    %cst_64 = arith.constant 0.327591091 : f32
    %158 = vector.broadcast %cst_64 : f32 to vector<16x64xf32>
    %159 = arith.mulf %158, %157 : vector<16x64xf32>
    %cst_65 = arith.constant 1.000000e+00 : f32
    %160 = vector.broadcast %cst_65 : f32 to vector<16x64xf32>
    %161 = arith.addf %160, %159 : vector<16x64xf32>
    %162 = tpu.reciprocal %161 {approx = true} : vector<16x64xf32> -> vector<16x64xf32>
    %cst_66 = arith.constant 1.06140542 : f32
    %163 = vector.broadcast %cst_66 : f32 to vector<16x64xf32>
    %164 = arith.mulf %163, %162 : vector<16x64xf32>
    %cst_67 = arith.constant -1.45315206 : f32
    %165 = vector.broadcast %cst_67 : f32 to vector<16x64xf32>
    %166 = arith.addf %164, %165 : vector<16x64xf32>
    %167 = arith.mulf %166, %162 : vector<16x64xf32>
    %cst_68 = arith.constant 1.42141378 : f32
    %168 = vector.broadcast %cst_68 : f32 to vector<16x64xf32>
    %169 = arith.addf %167, %168 : vector<16x64xf32>
    %170 = arith.mulf %169, %162 : vector<16x64xf32>
    %cst_69 = arith.constant -0.284496725 : f32
    %171 = vector.broadcast %cst_69 : f32 to vector<16x64xf32>
    %172 = arith.addf %170, %171 : vector<16x64xf32>
    %173 = arith.mulf %172, %162 : vector<16x64xf32>
    %cst_70 = arith.constant 0.254829586 : f32
    %174 = vector.broadcast %cst_70 : f32 to vector<16x64xf32>
    %175 = arith.addf %173, %174 : vector<16x64xf32>
    %176 = arith.mulf %175, %162 : vector<16x64xf32>
    %cst_71 = arith.constant 0.000000e+00 : f32
    %177 = vector.broadcast %cst_71 : f32 to vector<16x64xf32>
    %178 = arith.subf %177, %157 : vector<16x64xf32>
    %179 = arith.mulf %178, %157 : vector<16x64xf32>
    %180 = math.exp %179 : vector<16x64xf32>
    %181 = arith.mulf %176, %180 : vector<16x64xf32>
    %cst_72 = arith.constant 1.000000e+00 : f32
    %182 = vector.broadcast %cst_72 : f32 to vector<16x64xf32>
    %183 = arith.subf %182, %181 : vector<16x64xf32>
    %184 = arith.mulf %156, %183 : vector<16x64xf32>
    %cst_73 = arith.constant 1.000000e+00 : f32
    %185 = vector.broadcast %cst_73 : f32 to vector<16x64xf32>
    %186 = arith.addf %185, %184 : vector<16x64xf32>
    %187 = arith.mulf %149, %186 : vector<16x64xf32>
    %188 = arith.truncf %187 : vector<16x64xf32> to vector<16x64xbf16>
    %c0_74 = arith.constant 0 : index
    %c0_75 = arith.constant 0 : index
    %189 = vector.load %arg11[%c0_74, %c0_75] : memref<64x32xbf16, #tpu.memory_space<vmem>>, vector<64x32xbf16>
    %cst_76 = arith.constant dense<0.000000e+00> : vector<16x32xf32>
    %190 = tpu.matmul %188, %189, %cst_76 {dimension_numbers = #tpu.dot_dimension_numbers<[1], [0], [0], [1], [0, 0, 1, 1], [], []>} : vector<16x64xbf16>, vector<64x32xbf16>, vector<16x32xf32> -> vector<16x32xf32>
    %c0_77 = arith.constant 0 : index
    %c0_78 = arith.constant 0 : index
    %191 = vector.load %arg12[%c0_77, %c0_78] : memref<1x32xf32, #tpu.memory_space<vmem>>, vector<1x32xf32>
    %192 = vector.broadcast %191 : vector<1x32xf32> to vector<16x32xf32>
    %193 = arith.addf %190, %192 : vector<16x32xf32>
    %194 = arith.addf %141, %193 : vector<16x32xf32>
    %c0_79 = arith.constant 0 : index
    %c0_80 = arith.constant 0 : index
    %195 = vector.load %arg13[%c0_79, %c0_80] : memref<1x32xf32, #tpu.memory_space<vmem>>, vector<1x32xf32>
    %c0_81 = arith.constant 0 : index
    %c0_82 = arith.constant 0 : index
    %196 = vector.load %arg14[%c0_81, %c0_82] : memref<1x32xf32, #tpu.memory_space<vmem>>, vector<1x32xf32>
    %cst_83 = arith.constant dense<0.000000e+00> : vector<16xf32>
    %197 = vector.multi_reduction <add>, %194, %cst_83 [1] : vector<16x32xf32> to vector<16xf32>
    %198 = vector.shape_cast %197 : vector<16xf32> to vector<16x1xf32>
    %cst_84 = arith.constant 3.200000e+01 : f32
    %199 = vector.broadcast %cst_84 : f32 to vector<16x1xf32>
    %200 = arith.divf %198, %199 : vector<16x1xf32>
    %201 = vector.broadcast %200 : vector<16x1xf32> to vector<16x32xf32>
    %202 = arith.subf %194, %201 : vector<16x32xf32>
    %203 = arith.mulf %202, %202 : vector<16x32xf32>
    %cst_85 = arith.constant dense<0.000000e+00> : vector<16xf32>
    %204 = vector.multi_reduction <add>, %203, %cst_85 [1] : vector<16x32xf32> to vector<16xf32>
    %205 = vector.shape_cast %204 : vector<16xf32> to vector<16x1xf32>
    %cst_86 = arith.constant 3.200000e+01 : f32
    %206 = vector.broadcast %cst_86 : f32 to vector<16x1xf32>
    %207 = arith.divf %205, %206 : vector<16x1xf32>
    %cst_87 = arith.constant 9.99999974E-6 : f32
    %208 = vector.broadcast %cst_87 : f32 to vector<16x1xf32>
    %209 = arith.addf %207, %208 : vector<16x1xf32>
    %210 = math.rsqrt %209 : vector<16x1xf32>
    %211 = vector.broadcast %210 : vector<16x1xf32> to vector<16x32xf32>
    %212 = arith.mulf %202, %211 : vector<16x32xf32>
    %213 = vector.broadcast %195 : vector<1x32xf32> to vector<16x32xf32>
    %214 = arith.mulf %212, %213 : vector<16x32xf32>
    %215 = vector.broadcast %196 : vector<1x32xf32> to vector<16x32xf32>
    %216 = arith.addf %214, %215 : vector<16x32xf32>
    %217 = vector.shape_cast %216 : vector<16x32xf32> to vector<2x8x32xf32>
    %c0_88 = arith.constant 0 : index
    %c0_89 = arith.constant 0 : index
    %c0_90 = arith.constant 0 : index
    %218 = vector.load %arg15[%c0_88, %c0_89, %c0_90] : memref<2x8x32xf32, #tpu.memory_space<vmem>>, vector<2x8x32xf32>
    tpu.vector_store %arg15[%c0_88, %c0_89, %c0_90], %217 {strides = array<i32>} : memref<2x8x32xf32, #tpu.memory_space<vmem>>, vector<2x8x32xf32>,
    return
  }
  func.func @transform_0(%arg0: i32) -> (i32, i32, i32) {
    %c0_i32 = arith.constant 0 : i32
    %c0_i32_0 = arith.constant 0 : i32
    %c0_i32_1 = arith.constant 0 : i32
    return %arg0, %c0_i32, %c0_i32_0 : i32, i32, i32
  }
  func.func @transform_1(%arg0: i32) -> (i32, i32, i32) {
    %c0_i32 = arith.constant 0 : i32
    %c0_i32_0 = arith.constant 0 : i32
    %c0_i32_1 = arith.constant 0 : i32
    return %arg0, %c0_i32, %c0_i32_0 : i32, i32, i32
  }
  func.func @transform_2(%arg0: i32) -> (i32, i32) {
    %c0_i32 = arith.constant 0 : i32
    %c0_i32_0 = arith.constant 0 : i32
    %c0_i32_1 = arith.constant 0 : i32
    return %c0_i32, %c0_i32_0 : i32, i32
  }
  func.func @transform_3(%arg0: i32) -> (i32, i32) {
    %c0_i32 = arith.constant 0 : i32
    %c0_i32_0 = arith.constant 0 : i32
    %c0_i32_1 = arith.constant 0 : i32
    return %c0_i32, %c0_i32_0 : i32, i32
  }
  func.func @transform_4(%arg0: i32) -> (i32, i32, i32) {
    %c0_i32 = arith.constant 0 : i32
    %c0_i32_0 = arith.constant 0 : i32
    %c0_i32_1 = arith.constant 0 : i32
    %c0_i32_2 = arith.constant 0 : i32
    return %c0_i32, %c0_i32_0, %c0_i32_1 : i32, i32, i32
  }
  func.func @transform_5(%arg0: i32) -> (i32, i32) {
    %c0_i32 = arith.constant 0 : i32
    %c0_i32_0 = arith.constant 0 : i32
    %c0_i32_1 = arith.constant 0 : i32
    return %c0_i32, %c0_i32_0 : i32, i32
  }
  func.func @transform_6(%arg0: i32) -> (i32, i32) {
    %c0_i32 = arith.constant 0 : i32
    %c0_i32_0 = arith.constant 0 : i32
    %c0_i32_1 = arith.constant 0 : i32
    return %c0_i32, %c0_i32_0 : i32, i32
  }
  func.func @transform_7(%arg0: i32) -> (i32, i32) {
    %c0_i32 = arith.constant 0 : i32
    %c0_i32_0 = arith.constant 0 : i32
    %c0_i32_1 = arith.constant 0 : i32
    return %c0_i32, %c0_i32_0 : i32, i32
  }
  func.func @transform_8(%arg0: i32) -> (i32, i32) {
    %c0_i32 = arith.constant 0 : i32
    %c0_i32_0 = arith.constant 0 : i32
    %c0_i32_1 = arith.constant 0 : i32
    return %c0_i32, %c0_i32_0 : i32, i32
  }
  func.func @transform_9(%arg0: i32) -> (i32, i32) {
    %c0_i32 = arith.constant 0 : i32
    %c0_i32_0 = arith.constant 0 : i32
    %c0_i32_1 = arith.constant 0 : i32
    return %c0_i32, %c0_i32_0 : i32, i32
  }
  func.func @transform_10(%arg0: i32) -> (i32, i32) {
    %c0_i32 = arith.constant 0 : i32
    %c0_i32_0 = arith.constant 0 : i32
    %c0_i32_1 = arith.constant 0 : i32
    return %c0_i32, %c0_i32_0 : i32, i32
  }
  func.func @transform_11(%arg0: i32) -> (i32, i32) {
    %c0_i32 = arith.constant 0 : i32
    %c0_i32_0 = arith.constant 0 : i32
    %c0_i32_1 = arith.constant 0 : i32
    return %c0_i32, %c0_i32_0 : i32, i32
  }
  func.func @transform_12(%arg0: i32) -> (i32, i32) {
    %c0_i32 = arith.constant 0 : i32
    %c0_i32_0 = arith.constant 0 : i32
    %c0_i32_1 = arith.constant 0 : i32
    return %c0_i32, %c0_i32_0 : i32, i32
  }
  func.func @transform_13(%arg0: i32) -> (i32, i32) {
    %c0_i32 = arith.constant 0 : i32
    %c0_i32_0 = arith.constant 0 : i32
    %c0_i32_1 = arith.constant 0 : i32
    return %c0_i32, %c0_i32_0 : i32, i32
  }
  func.func @transform_14(%arg0: i32) -> (i32, i32, i32) {
    %c0_i32 = arith.constant 0 : i32
    %c0_i32_0 = arith.constant 0 : i32
    %c0_i32_1 = arith.constant 0 : i32
    return %arg0, %c0_i32, %c0_i32_0 : i32, i32, i32
  }
}

</mosaic_0001>

<bundles_post_ra>
// kernel: tpu_custom_call.1
= control target key start
LH: loop header
LB: loop body
LE: loop exit
PB: predicated region body
PF: predicated region fallthrough
CT: control target
= control target key end

     0   :  { %19 = vsyncpa [#allocation3], 0  ;;  %s2355_s0 = inlined_call_operand.vmem [shape: f32[2,8,32], index: 0, kind: input, shape index: {}]   ;;  %s2356_s1 = inlined_call_operand.vmem [shape: f32[2,1,8], index: 1, kind: input, shape index: {}]   ;;  %s2357_s2 = inlined_call_operand.vmem [shape: bf16[32,96], index: 2, kind: input, shape index: {}]   ;;  %s2358_s3 = inlined_call_operand.vmem [shape: f32[1,96], index: 3, kind: input, shape index: {}]   ;;  %s2359_s4 = inlined_call_operand.vmem [shape: bf16[4,8,32], index: 4, kind: input, shape index: {}]   ;;  %s2360_s5 = inlined_call_operand.vmem [shape: f32[1,32], index: 5, kind: input, shape index: {}]   ;;  %s2361_s6 = inlined_call_operand.vmem [shape: f32[1,32], index: 6, kind: input, shape index: {}]   ;;  %s2362_s7 = inlined_call_operand.vmem [shape: f32[1,32], index: 7, kind: input, shape index: {}]   ;;  %s2363_s8 = inlined_call_operand.hbm [shape: bf16[32,64], index: 8, kind: input, shape index: {}]   ;;  %s2364_s9 = inlined_call_operand.vmem [shape: f32[1,64], index: 9, kind: input, shape index: {}]   ;;  %s2365_s10 = inlined_call_operand.vmem [shape: bf16[64,32], index: 10, kind: input, shape index: {}]   ;;  %s2366_s11 = inlined_call_operand.vmem [shape: f32[1,32], index: 11, kind: input, shape index: {}]   ;;  %s2367_s12 = inlined_call_operand.vmem [shape: f32[1,32], index: 12, kind: input, shape index: {}]   ;;  %s2368_s13 = inlined_call_operand.vmem [shape: f32[1,32], index: 13, kind: input, shape index: {}]   ;;  %s2369_s14 = inlined_call_operand.hbm [shape: f32[2,8,32], index: 14, kind: output, shape index: {}]  }
   0x1   :  { %20 = vsyncpa [#allocation4], 0  ;;  %s1947_s29 = smov [#allocation2]   ;;  %s1899_s17 = scalar_lea.hbm %s2363_s8, 256 }
   0x2   :  { %s42_s30 = sshll.u32 %s1947_s29, 4  ;;  %p1900_p0 = scmp.ne.s32.totalorder %s2363_s8, %s1899_s17  ;;  %s43_s30 = int_to_ptr.vmem [resolvable:$true] %s42_s30 }
   0x3   :  { %p1903_p1 = scmp.lt.u32.totalorder %s1899_s17, %s2363_s8 }
   0x5   :  { %p1905_p2 = pnand %p1903_p1, %p1900_p0 }
   0x7   :  { %1908 = shalt.err (!%p1905_p2)
}
   0x8   :  { %s1909_s22 = scalar_lea.vmem %s43_s30, 256  ;;  %p1914_p4 = scmp.lt.s32.totalorder %s43_s30, %s43_s30 }
   0x9   :  { %p1910_p3 = scmp.ne.s32.totalorder %s43_s30, %s1909_s22  ;;  %p1915_p5 = scmp.lt.s32.totalorder %s1909_s22, %s1909_s22 }
   0xb   :  { %p1916_p6 = por %p1915_p5, %p1914_p4 }
   0xd   :  { %p1917_p7 = pnand %p1916_p6, %p1910_p3 }
   0xf   :  { %1920 = shalt.err (!%p1917_p7)
}
  0x10   :  { %s1948_s23 = smov 64   ;;  %s1949_s24 = smov 4  }
  0x11   :  { %48 = dma.hbm_to_vmem [thread:$0]  %s2363_s8, 256, %s43_s30, [#allocation3], %s1948_s23, %s1948_s23, %s1949_s24  }
  0x12   :  { %1943 = dma.done.wait [#allocation3], 256  }
  0x13   :  { %1944 = vsyncadd [#allocation3], 4294967040  ;;  %v1950_v0 = vmov 0.0   ;;  %vm1951_vm0 = vmmov 0   ;;  %v1843_v1 = vld [vmem:[%s2357_s2] sm:$0xff]   ;;  %v1844_v2 = vld [vmem:[%s2357_s2 + $0x8] sm:$0xff]  }
  0x14   :  { %1676 = vmatprep.subr.bf16.mxu1 %v1950_v0  ;;  %1680 = vmatprep.mubr.msk.bf16.mxu1 %vm1951_vm0, %v1950_v0  ;;  %v2070_v3 = vld [vmem:[%s2355_s0] sm:$0xff]  ;;  %v2075_v4 = vld [vmem:[%s2355_s0 + $0x8] sm:$0xff]  ;;  %vm91_vm1 = vcmask 261120   ;;  %s1952_s0 = smov 96   ;;  %vm144_vm2 = vcmask 64512   ;;  %vm284_vm3 = vcmask 1043456  }
  0x15   :  { %1690 = vmatprep.subr.bf16.mxu0 %v1950_v0  ;;  %1692 = vmatprep.mubr.msk.bf16.mxu0 %vm1951_vm0, %v1950_v0  ;;  %v67_v5 = vpack.c.bf16 %v2075_v4, %v2070_v3  ;;  %v1577_v6 = vld [vmem:[%s2358_s3] ss:$0 sm:$0xff]  ;;  %v2114_v27 = vld [vmem:[%s2356_s1 + $0x1] ss:$0 sm:$0xff]  ;;  %s1954_s22 = smov 120   ;;  %s1956_s24 = smov 112  }
  0x16   :  { %1677 = vmatpush3.bf16.msra.mxu1 %v1843_v1  ;;  %v2108_v20 = vld [vmem:[%s2356_s1] ss:$0 sm:$0xff]  ;;  %s1953_s1 = smov 88   ;;  %s1957_s25 = smov 80   ;;  %vm1467_vm6 = vcmask 523264  }
  0x17   :  { %1678 = vmatprep.subr.bf16.mxu1 %v1950_v0  ;;  %s1958_s29 = smov 48   ;;  %s1959_s30 = smov 72  }
  0x18   :  { %s1960_s15 = smov 104   ;;  %s1961_s2 = smov 40  }
  0x1a   :  { %1679 = vmatpush3.bf16.msra.mxu1 %v1844_v2 }
  0x1b   :  { %1684 = vmatprep.subr.bf16.mxu1 %v1950_v0 }
  0x1d   :  { %1681 = vmatmul.mubr.msk.bf16.vlgmr.msra.gmra.mrb[0].mxu1 %vm91_vm1, %v67_v5 }
  0x1e   :  { %1686 = vmatprep.mubr.msk.bf16.mxu1 %vm1951_vm0, %v1950_v0 }
  0xf0   :  { %v129_v7 = vpop.f32.mrb[0].mxu1 }
  0xf1   :  { %v130_v8 = vadd.f32 %v1577_v6, %v129_v7  ;;  %v1682_v9 = vpop.f32.mrb[1].mxu1 }
  0xf2   :  { %v132_v10 = vpop.f32.mrb[2].mxu1 }
  0xf3   :  { %v2087_v11 = vpack.c.bf16 %v130_v8, %v130_v8  ;;  %v133_v12 = vadd.f32 %v1577_v6, %v132_v10  ;;  %v1683_v13 = vpop.f32.mrb[3].mxu1 }
  0xf5   :  { %142 = vrot.lane.b32.xlu0 %v2087_v11, %s1952_s0  ;;  %v2090_v14 = vpack.c.bf16 %v133_v12, %v133_v12 }
  0xf9   :  { %191 = vrot.lane.b32.xlu0 %v2090_v14, %s1952_s0 }
 0x167   :  { %v143_v15 = vpop.permute.xlu0 %142 }
 0x168   :  { %v149_v16 = vsel %vm144_vm2, %v143_v15, 0 }
 0x169   :  { %1685 = vmatpush3.bf16.xpose.msra.mxu1 %v149_v16 }
 0x16a   :  { %1696 = vmatprep.subr.bf16.mxu1 %v1950_v0 }
 0x16b   :  { %v192_v17 = vpop.permute.xlu0 %191 }
 0x16c   :  { %v197_v18 = vsel %vm144_vm2, %v192_v17, 0 }
 0x16d   :  { %1691 = vmatpush3.bf16.xpose.msra.mxu0 %v197_v18 }
 0x16e   :  { %1702 = vmatprep.subr.bf16.mxu0 %v1950_v0 }
 0x170   :  { %1687 = vmatmul.mubr.msk.bf16.vlgmr.msra.gmra.mrb[4].mxu1 %vm144_vm2, %v2087_v11 }
 0x171   :  { %1698 = vmatprep.mubr.msk.bf16.mxu1 %vm1951_vm0, %v1950_v0 }
 0x174   :  { %1693 = vmatmul.mubr.msk.bf16.vlgmr.msra.gmra.mrb[0].mxu0 %vm144_vm2, %v2090_v14 }
 0x175   :  { %1704 = vmatprep.mubr.msk.bf16.mxu0 %vm1951_vm0, %v1950_v0 }
 0x243   :  { %v185_v19 = vpop.f32.mrb[4].mxu1 }
 0x244   :  { %v239_v21 = vmul.f32 0.35355338, %v185_v19  ;;  %v1688_v22 = vpop.f32.mrb[5].mxu1 }
 0x245   :  { %v188_v23 = vpop.f32.mrb[6].mxu1 }
 0x246   :  { %v1689_v24 = vpop.f32.mrb[7].mxu1  ;;  %v253_v25 = vadd.f32 %v2108_v20, %v239_v21 }
 0x247   :  { %v233_v26 = vpop.f32.mrb[0].mxu0 }
 0x248   :  { %v240_v28 = vmul.f32 0.35355338, %v233_v26  ;;  %v1694_v29 = vpop.f32.mrb[1].mxu0  ;;  %v255_v30 = vsel %vm144_vm2, %v253_v25, -inf }
 0x249   :  { %v236_v31 = vpop.f32.mrb[2].mxu0  ;;  %256 = vmax.xlane.f32.xlu1 %v255_v30 }
 0x24a   :  { %v1695_v32 = vpop.f32.mrb[3].mxu0  ;;  %v254_v33 = vadd.f32 %v2114_v27, %v240_v28 }
 0x24c   :  { %v258_v34 = vsel %vm144_vm2, %v254_v33, -inf }
 0x24d   :  { %259 = vmax.xlane.f32.xlu1 %v258_v34 }
 0x25e   :  { %279 = vrot.lane.b32.xlu1 %v2087_v11, %s1948_s23 }
 0x262   :  { %328 = vrot.lane.b32.xlu1 %v2090_v14, %s1948_s23  ;;  %s1955_s23 = smov 56  }
 0x266   :  { %380 = vrot.lane.b32.xlu1 %v2087_v11, %s1953_s1 }
 0x2d6   :  { %v257_v35 = vpop.xlane.xlu1 %256 }
 0x2d7   :  { %v261_v36 = vsub.f32 %v253_v25, %v257_v35 }
 0x2d9   :  { %v263_v37 = vmul.f32 1.442695, %v261_v36 }
 0x2da   :  { %v260_v38 = vpop.xlane.xlu1 %259 }
 0x2db   :  { %1851 = vpow2.f32 %v263_v37  ;;  %v262_v39 = vsub.f32 %v254_v33, %v260_v38 }
 0x2dd   :  { %v265_v40 = vmul.f32 1.442695, %v262_v39 }
 0x2de   :  { %v280_v41 = vpop.permute.xlu1 %279 }
 0x2df   :  { %1853 = vpow2.f32 %v265_v40  ;;  %v286_v42 = vsel %vm284_vm3, %v280_v41, 0 }
 0x2e0   :  { %1697 = vmatpush3.bf16.msra.mxu1 %v286_v42 }
 0x2e1   :  { %1708 = vmatprep.subr.bf16.mxu1 %v1950_v0 }
 0x2e2   :  { %v329_v43 = vpop.permute.xlu1 %328 }
 0x2e3   :  { %v334_v44 = vsel %vm284_vm3, %v329_v43, 0 }
 0x2e4   :  { %1703 = vmatpush3.bf16.msra.mxu0 %v334_v44 }
 0x2e5   :  { %v1852_v45 = vpop.eup %1851  ;;  %1714 = vmatprep.subr.bf16.mxu0 %v1950_v0 }
 0x2e6   :  { %v267_v46 = vsel %vm144_vm2, %v1852_v45, 0.0  ;;  %v381_v49 = vpop.permute.xlu1 %380 }
 0x2e7   :  { %268 = vadd.xlane.f32.xlu0 %v267_v46  ;;  %v386_v56 = vsel %vm144_vm2, %v381_v49, 0  ;;  %v1593_v46 = vld [vmem:[%s2359_s4 + $0x4] sm:$0xf] }
 0x2e8   :  { %v609_v49 = vsel %vm284_vm3, %v1593_v46, 0 }
 0x2e9   :  { %v1854_v47 = vpop.eup %1853 }
 0x2ea   :  { %v270_v48 = vsel %vm144_vm2, %v1854_v47, 0.0 }
 0x2eb   :  { %271 = vadd.xlane.f32.xlu1 %v270_v48 }
 0x2fc   :  { %430 = vrot.lane.b32.xlu1 %v2090_v14, %s1953_s1 }
 0x2fd   :  { %378 = vrot.lane.b32.xlu0 %v2087_v11, %s1954_s22 }
 0x300   :  { %428 = vrot.lane.b32.xlu1 %v2090_v14, %s1954_s22 }
 0x374   :  { %v269_v50 = vpop.xlane.xlu0 %268 }
 0x375   :  { %1855 = vrcp.f32 %v269_v50 }
 0x378   :  { %v272_v51 = vpop.xlane.xlu1 %271  ;;  %v379_v61 = vpop.permute.xlu0 %378 }
 0x379   :  { %1857 = vrcp.f32 %v272_v51  ;;  %v377_v51 = vld [vmem:[%s2359_s4] sm:$0xf] }
 0x37c   :  { %v431_v58 = vpop.permute.xlu1 %430 }
 0x37d   :  { %v436_v60 = vsel %vm144_vm2, %v431_v58, 0 }
 0x37f   :  { %v1856_v52 = vpop.eup %1855 }
 0x380   :  { %v275_v53 = vmul.f32 %v1856_v52, %v1852_v45  ;;  %v429_v62 = vpop.permute.xlu1 %428 }
 0x382   :  { %v277_v54 = vpack.c.bf16 %v275_v53, %v275_v53 }
 0x383   :  { %v1858_v55 = vpop.eup %1857 }
 0x384   :  { %v276_v57 = vmul.f32 %v1858_v55, %v1854_v47  ;;  %1699 = vmatmul.mubr.msk.bf16.vlgmr.msra.gmra.mrb[8].mxu1 %vm144_vm2, %v277_v54  ;;  %v656_v54 = vsel %vm284_vm3, %v377_v51, 0 }
 0x385   :  { %1709 = vmatpush3.bf16.xpose.msra.mxu1 %v386_v56  ;;  %1710 = vmatprep.mubr.msk.bf16.mxu1 %vm1951_vm0, %v1950_v0 }
 0x386   :  { %v278_v59 = vpack.c.bf16 %v276_v57, %v276_v57  ;;  %1720 = vmatprep.subr.bf16.mxu1 %v1950_v0 }
 0x388   :  { %1705 = vmatmul.mubr.msk.bf16.vlgmr.msra.gmra.mrb[4].mxu0 %vm144_vm2, %v278_v59 }
 0x389   :  { %1715 = vmatpush3.bf16.xpose.msra.mxu0 %v436_v60  ;;  %1716 = vmatprep.mubr.msk.bf16.mxu0 %vm1951_vm0, %v1950_v0 }
 0x38a   :  { %1726 = vmatprep.subr.bf16.mxu0 %v1950_v0 }
 0x38c   :  { %1711 = vmatmul.mubr.msk.bf16.vlgmr.msra.gmra.mrb[12].mxu1 %vm144_vm2, %v379_v61 }
 0x38d   :  { %1722 = vmatprep.mubr.msk.bf16.mxu1 %vm1951_vm0, %v1950_v0 }
 0x390   :  { %1717 = vmatmul.mubr.msk.bf16.vlgmr.msra.gmra.mrb[8].mxu0 %vm144_vm2, %v429_v62 }
 0x391   :  { %1728 = vmatprep.mubr.msk.bf16.mxu0 %vm1951_vm0, %v1950_v0 }
 0x457   :  { %v2149_v63 = vpop.f32.mrb[8].mxu1 }
 0x458   :  { %v1700_v1 = vpop.f32.mrb[9].mxu1 }
 0x459   :  { %v325_v2 = vpop.f32.mrb[10].mxu1 }
 0x45a   :  { %v1701_v5 = vpop.f32.mrb[11].mxu1 }
 0x45b   :  { %v2151_v6 = vpop.f32.mrb[4].mxu0 }
 0x45c   :  { %v376_v7 = vpack.c.bf16 %v2151_v6, %v2149_v63  ;;  %v1706_v8 = vpop.f32.mrb[5].mxu0 }
 0x45d   :  { %v373_v9 = vpop.f32.mrb[6].mxu0 }
 0x45e   :  { %v1707_v10 = vpop.f32.mrb[7].mxu0 }
 0x45f   :  { %v422_v12 = vpop.f32.mrb[12].mxu1 }
 0x460   :  { %v478_v13 = vmul.f32 0.35355338, %v422_v12  ;;  %v1712_v15 = vpop.f32.mrb[13].mxu1 }
 0x461   :  { %v425_v16 = vpop.f32.mrb[14].mxu1 }
 0x462   :  { %v1713_v17 = vpop.f32.mrb[15].mxu1  ;;  %v480_v18 = vadd.f32 %v2108_v20, %v478_v13 }
 0x463   :  { %v472_v19 = vpop.f32.mrb[8].mxu0 }
 0x464   :  { %v479_v21 = vmul.f32 0.35355338, %v472_v19  ;;  %v1718_v22 = vpop.f32.mrb[9].mxu0  ;;  %v482_v23 = vsel %vm144_vm2, %v480_v18, -inf }
 0x465   :  { %v475_v24 = vpop.f32.mrb[10].mxu0  ;;  %483 = vmax.xlane.f32.xlu1 %v482_v23 }
 0x466   :  { %v1719_v25 = vpop.f32.mrb[11].mxu0  ;;  %v481_v26 = vadd.f32 %v2114_v27, %v479_v21 }
 0x468   :  { %v485_v28 = vsel %vm144_vm2, %v481_v26, -inf }
 0x469   :  { %486 = vmax.xlane.f32.xlu0 %v485_v28 }
 0x47f   :  { %554 = vrot.lane.b32.xlu0 %v2090_v14, %s1955_s23 }
 0x483   :  { %699 = vrot.lane.b32.xlu0 %v2087_v11, %s1956_s24 }
 0x4f2   :  { %v484_v29 = vpop.xlane.xlu1 %483 }
 0x4f3   :  { %v488_v30 = vsub.f32 %v480_v18, %v484_v29 }
 0x4f5   :  { %v490_v31 = vmul.f32 1.442695, %v488_v30 }
 0x4f6   :  { %v487_v32 = vpop.xlane.xlu0 %486 }
 0x4f7   :  { %1859 = vpow2.f32 %v490_v31  ;;  %v489_v33 = vsub.f32 %v481_v26, %v487_v32 }
 0x4f9   :  { %v492_v34 = vmul.f32 1.442695, %v489_v33 }
 0x4fa   :  { %v555_v35 = vpop.permute.xlu0 %554 }
 0x4fb   :  { %1861 = vpow2.f32 %v492_v34  ;;  %v560_v36 = vsel %vm284_vm3, %v555_v35, 0 }
 0x4fc   :  { %1727 = vmatpush3.bf16.msra.mxu0 %v560_v36 }
 0x4fd   :  { %1738 = vmatprep.subr.bf16.mxu0 %v1950_v0 }
 0x4fe   :  { %v700_v10 = vpop.permute.xlu0 %699 }
 0x501   :  { %v1860_v37 = vpop.eup %1859 }
 0x502   :  { %v494_v38 = vsel %vm144_vm2, %v1860_v37, 0.0 }
 0x503   :  { %495 = vadd.xlane.f32.xlu1 %v494_v38 }
 0x505   :  { %v1862_v39 = vpop.eup %1861 }
 0x506   :  { %v497_v40 = vsel %vm144_vm2, %v1862_v39, 0.0 }
 0x507   :  { %498 = vadd.xlane.f32.xlu1 %v497_v40 }
 0x518   :  { %506 = vrot.lane.b32.xlu1 %v2087_v11, %s1955_s23 }
 0x51c   :  { %701 = vrot.lane.b32.xlu1 %v2087_v11, %s1957_s25 }
 0x520   :  { %751 = vrot.lane.b32.xlu1 %v2090_v14, %s1957_s25 }
 0x524   :  { %749 = vrot.lane.b32.xlu1 %v2090_v14, %s1956_s24 }
 0x590   :  { %v496_v41 = vpop.xlane.xlu1 %495 }
 0x591   :  { %1863 = vrcp.f32 %v496_v41 }
 0x594   :  { %v499_v42 = vpop.xlane.xlu1 %498 }
 0x595   :  { %1865 = vrcp.f32 %v499_v42 }
 0x598   :  { %v507_v43 = vpop.permute.xlu1 %506 }
 0x599   :  { %v512_v44 = vsel %vm284_vm3, %v507_v43, 0 }
 0x59a   :  { %1721 = vmatpush3.bf16.msra.mxu1 %v512_v44 }
 0x59b   :  { %v1864_v45 = vpop.eup %1863  ;;  %1732 = vmatprep.subr.bf16.mxu1 %v1950_v0 }
 0x59c   :  { %v502_v47 = vmul.f32 %v1864_v45, %v1860_v37  ;;  %v702_v55 = vpop.permute.xlu1 %701 }
 0x59d   :  { %v707_v6 = vsel %vm144_vm2, %v702_v55, 0 }
 0x59e   :  { %v504_v48 = vpack.c.bf16 %v502_v47, %v502_v47 }
 0x59f   :  { %v1866_v50 = vpop.eup %1865 }
 0x5a0   :  { %v503_v52 = vmul.f32 %v1866_v50, %v1862_v39  ;;  %1723 = vmatmul.mubr.msk.bf16.vlgmr.msra.gmra.mrb[16].mxu1 %vm144_vm2, %v504_v48  ;;  %v752_v56 = vpop.permute.xlu1 %751 }
 0x5a1   :  { %1733 = vmatpush3.bf16.msra.mxu1 %v609_v49  ;;  %1734 = vmatprep.mubr.msk.bf16.mxu1 %vm1951_vm0, %v1950_v0  ;;  %v757_v57 = vsel %vm144_vm2, %v752_v56, 0 }
 0x5a2   :  { %v505_v53 = vpack.c.bf16 %v503_v52, %v503_v52  ;;  %1744 = vmatprep.subr.bf16.mxu1 %v1950_v0 }
 0x5a4   :  { %1729 = vmatmul.mubr.msk.bf16.vlgmr.msra.gmra.mrb[12].mxu0 %vm144_vm2, %v505_v53  ;;  %v750_v58 = vpop.permute.xlu1 %749 }
 0x5a5   :  { %1739 = vmatpush3.bf16.msra.mxu0 %v656_v54  ;;  %1740 = vmatprep.mubr.msk.bf16.mxu0 %vm1951_vm0, %v1950_v0 }
 0x5a6   :  { %1750 = vmatprep.subr.bf16.mxu0 %v1950_v0 }
 0x5ac   :  { %1741 = vmatmul.mubr.msk.bf16.vlgmr.msra.gmra.mrb[16].mxu0 %vm144_vm2, %v376_v7 }
 0x5ad   :  { %1752 = vmatprep.mubr.msk.bf16.mxu0 %vm1951_vm0, %v1950_v0 }
 0x5ae   :  { %1751 = vmatpush3.bf16.xpose.msra.mxu0 %v757_v57 }
 0x5af   :  { %1762 = vmatprep.subr.bf16.mxu0 %v1950_v0 }
 0x5b5   :  { %1753 = vmatmul.mubr.msk.bf16.vlgmr.msra.gmra.mrb[20].mxu0 %vm144_vm2, %v750_v58 }
 0x5b6   :  { %1764 = vmatprep.mubr.msk.bf16.mxu0 %vm1951_vm0, %v1950_v0 }
 0x673   :  { %v548_v59 = vpop.f32.mrb[16].mxu1 }
 0x674   :  { %v1724_v60 = vpop.f32.mrb[17].mxu1 }
 0x675   :  { %v551_v61 = vpop.f32.mrb[18].mxu1 }
 0x676   :  { %v1725_v62 = vpop.f32.mrb[19].mxu1 }
 0x677   :  { %v596_v63 = vpop.f32.mrb[12].mxu0  ;;  %v1600_v62 = vld [vmem:[%s2359_s4 + $0x8] sm:$0xf] }
 0x678   :  { %v602_v1 = vpack.c.bf16 %v596_v63, %v548_v59  ;;  %v1730_v2 = vpop.f32.mrb[13].mxu0  ;;  %v930_v63 = vsel %vm284_vm3, %v1600_v62, 0 }
 0x679   :  { %v599_v5 = vpop.f32.mrb[14].mxu0 }
 0x67a   :  { %v1731_v7 = vpop.f32.mrb[15].mxu0  ;;  %1735 = vmatmul.mubr.msk.bf16.vlgmr.msra.gmra.mrb[20].mxu1 %vm144_vm2, %v602_v1 }
 0x67b   :  { %1745 = vmatpush3.bf16.xpose.msra.mxu1 %v707_v6  ;;  %1746 = vmatprep.mubr.msk.bf16.mxu1 %vm1951_vm0, %v1950_v0 }
 0x67c   :  { %1756 = vmatprep.subr.bf16.mxu1 %v1950_v0 }
 0x67f   :  { %v692_v8 = vpop.f32.mrb[16].mxu0 }
 0x680   :  { %v1742_v9 = vpop.f32.mrb[17].mxu0 }
 0x681   :  { %v695_v12 = vpop.f32.mrb[18].mxu0 }
 0x682   :  { %v1743_v13 = vpop.f32.mrb[19].mxu0  ;;  %1747 = vmatmul.mubr.msk.bf16.vlgmr.msra.gmra.mrb[24].mxu1 %vm144_vm2, %v700_v10 }
 0x683   :  { %1758 = vmatprep.mubr.msk.bf16.mxu1 %vm1951_vm0, %v1950_v0 }
 0x688   :  { %v793_v15 = vpop.f32.mrb[20].mxu0 }
 0x689   :  { %v800_v16 = vmul.f32 0.35355338, %v793_v15  ;;  %v1754_v17 = vpop.f32.mrb[21].mxu0 }
 0x68a   :  { %v796_v18 = vpop.f32.mrb[22].mxu0 }
 0x68b   :  { %v1755_v19 = vpop.f32.mrb[23].mxu0  ;;  %v802_v21 = vadd.f32 %v2114_v27, %v800_v16 }
 0x68d   :  { %v806_v22 = vsel %vm144_vm2, %v802_v21, -inf }
 0x68e   :  { %807 = vmax.xlane.f32.xlu1 %v806_v22 }
 0x69f   :  { %827 = vrot.lane.b32.xlu1 %v2087_v11, %s1958_s29 }
 0x6a3   :  { %977 = vrot.lane.b32.xlu1 %v2087_v11, %s1959_s30 }
 0x6a7   :  { %1027 = vrot.lane.b32.xlu1 %v2090_v14, %s1959_s30 }
 0x6ab   :  { %1025 = vrot.lane.b32.xlu1 %v2090_v14, %s1960_s15 }
 0x71b   :  { %v808_v23 = vpop.xlane.xlu1 %807 }
 0x71c   :  { %v810_v26 = vsub.f32 %v802_v21, %v808_v23 }
 0x71e   :  { %v813_v28 = vmul.f32 1.442695, %v810_v26 }
 0x71f   :  { %v828_v24 = vpop.permute.xlu1 %827 }
 0x720   :  { %v833_v25 = vsel %vm284_vm3, %v828_v24, 0  ;;  %1867 = vpow2.f32 %v813_v28 }
 0x721   :  { %1757 = vmatpush3.bf16.msra.mxu1 %v833_v25 }
 0x722   :  { %1768 = vmatprep.subr.bf16.mxu1 %v1950_v0 }
 0x723   :  { %v978_v57 = vpop.permute.xlu1 %977 }
 0x724   :  { %v983_v59 = vsel %vm144_vm2, %v978_v57, 0 }
 0x727   :  { %v1028_v7 = vpop.permute.xlu1 %1027 }
 0x728   :  { %v1033_v13 = vsel %vm144_vm2, %v1028_v7, 0 }
 0x72a   :  { %v1868_v42 = vpop.eup %1867 }
 0x72b   :  { %v818_v43 = vsel %vm144_vm2, %v1868_v42, 0.0  ;;  %v1026_v23 = vpop.permute.xlu1 %1025 }
 0x74d   :  { %v645_v29 = vpop.f32.mrb[20].mxu1 }
 0x74e   :  { %v2216_v30 = vadd.f32 %v692_v8, %v645_v29  ;;  %v1736_v31 = vpop.f32.mrb[21].mxu1 }
 0x74f   :  { %v648_v32 = vpop.f32.mrb[22].mxu1 }
 0x750   :  { %v2218_v33 = vadd.f32 %v695_v12, %v648_v32  ;;  %v1737_v34 = vpop.f32.mrb[23].mxu1 }
 0x755   :  { %v743_v35 = vpop.f32.mrb[24].mxu1 }
 0x756   :  { %v799_v36 = vmul.f32 0.35355338, %v743_v35  ;;  %v1748_v37 = vpop.f32.mrb[25].mxu1 }
 0x757   :  { %v746_v38 = vpop.f32.mrb[26].mxu1 }
 0x758   :  { %v1749_v39 = vpop.f32.mrb[27].mxu1  ;;  %v801_v40 = vadd.f32 %v2108_v20, %v799_v36 }
 0x75a   :  { %v803_v41 = vsel %vm144_vm2, %v801_v40, -inf }
 0x75b   :  { %804 = vmax.xlane.f32.xlu0 %v803_v41 }
 0x75f   :  { %819 = vadd.xlane.f32.xlu0 %v818_v43 }
 0x7e8   :  { %v805_v44 = vpop.xlane.xlu0 %804 }
 0x7e9   :  { %v809_v45 = vsub.f32 %v801_v40, %v805_v44 }
 0x7eb   :  { %v811_v46 = vmul.f32 1.442695, %v809_v45 }
 0x7ec   :  { %v820_v49 = vpop.xlane.xlu0 %819 }
 0x7ed   :  { %1869 = vpow2.f32 %v811_v46 }
 0x7ee   :  { %1871 = vrcp.f32 %v820_v49 }
 0x7f7   :  { %v1870_v47 = vpop.eup %1869 }
 0x7f8   :  { %v815_v48 = vsel %vm144_vm2, %v1870_v47, 0.0  ;;  %v1872_v50 = vpop.eup %1871 }
 0x7f9   :  { %816 = vadd.xlane.f32.xlu0 %v815_v48  ;;  %v824_v52 = vmul.f32 %v1872_v50, %v1868_v42 }
 0x7fb   :  { %v826_v55 = vpack.c.bf16 %v824_v52, %v824_v52  ;;  %v1606_v52 = vld [vmem:[%s2359_s4 + $0xc] sm:$0xf] }
 0x80f   :  { %875 = vrot.lane.b32.xlu0 %v2090_v14, %s1958_s29 }
 0x813   :  { %975 = vrot.lane.b32.xlu0 %v2087_v11, %s1960_s15  ;;  %s1963_s15 = smov [#allocation5]  }
 0x814   :  { %s1565_s16 = sshll.u32 %s1963_s15, 4  ;;  %s1566_s16 = int_to_ptr.vmem [resolvable:$true] %s1565_s16 }
 0x815   :  { %s1921_s17 = scalar_lea.vmem %s1566_s16, 256  ;;  %p1926_p9 = scmp.lt.s32.totalorder %s1566_s16, %s1566_s16 }
 0x816   :  { %p1922_p8 = scmp.ne.s32.totalorder %s1566_s16, %s1921_s17  ;;  %p1927_p10 = scmp.lt.s32.totalorder %s1921_s17, %s1921_s17 }
 0x818   :  { %p1928_p11 = por %p1927_p10, %p1926_p9 }
 0x81a   :  { %p1929_p12 = pnand %p1928_p11, %p1922_p8 }
 0x886   :  { %v817_v51 = vpop.xlane.xlu0 %816 }
 0x887   :  { %1873 = vrcp.f32 %v817_v51 }
 0x88a   :  { %v876_v53 = vpop.permute.xlu0 %875 }
 0x88b   :  { %v881_v54 = vsel %vm284_vm3, %v876_v53, 0  ;;  %v1206_v53 = vsel %vm284_vm3, %v1606_v52, 0  ;;  %v1611_v52 = vld [vmem:[%s2364_s9] ss:$0 sm:$0xff] }
 0x88c   :  { %1763 = vmatpush3.bf16.msra.mxu0 %v881_v54 }
 0x88d   :  { %1774 = vmatprep.subr.bf16.mxu0 %v1950_v0 }
 0x88e   :  { %v976_v61 = vpop.permute.xlu0 %975 }
 0x88f   :  { %1765 = vmatmul.mubr.msk.bf16.vlgmr.msra.gmra.mrb[24].mxu0 %vm144_vm2, %v826_v55 }
 0x890   :  { %1776 = vmatprep.mubr.msk.bf16.mxu0 %vm1951_vm0, %v1950_v0 }
 0x891   :  { %v1874_v56 = vpop.eup %1873 }
 0x892   :  { %v823_v58 = vmul.f32 %v1874_v56, %v1870_v47 }
 0x894   :  { %v825_v60 = vpack.c.bf16 %v823_v58, %v823_v58 }
 0x895   :  { %1775 = vmatpush3.bf16.xpose.msra.mxu0 %v983_v59 }
 0x896   :  { %1759 = vmatmul.mubr.msk.bf16.vlgmr.msra.gmra.mrb[28].mxu1 %vm144_vm2, %v825_v60  ;;  %1786 = vmatprep.subr.bf16.mxu0 %v1950_v0 }
 0x897   :  { %1770 = vmatprep.mubr.msk.bf16.mxu1 %vm1951_vm0, %v1950_v0  ;;  %1769 = vmatpush3.bf16.msra.mxu1 %v930_v63 }
 0x898   :  { %1780 = vmatprep.subr.bf16.mxu1 %v1950_v0 }
 0x89c   :  { %1777 = vmatmul.mubr.msk.bf16.vlgmr.msra.gmra.mrb[28].mxu0 %vm144_vm2, %v976_v61 }
 0x89d   :  { %1788 = vmatprep.mubr.msk.bf16.mxu0 %vm1951_vm0, %v1950_v0 }
 0x962   :  { %v917_v1 = vpop.f32.mrb[24].mxu0 }
 0x963   :  { %v1766_v2 = vpop.f32.mrb[25].mxu0 }
 0x964   :  { %v920_v5 = vpop.f32.mrb[26].mxu0 }
 0x965   :  { %v1767_v6 = vpop.f32.mrb[27].mxu0 }
 0x969   :  { %v869_v8 = vpop.f32.mrb[28].mxu1 }
 0x96a   :  { %v923_v9 = vpack.c.bf16 %v917_v1, %v869_v8  ;;  %v1760_v10 = vpop.f32.mrb[29].mxu1  ;;  %v1608_v8 = vld [vmem:[%s2360_s5] ss:$0 sm:$0xff] }
 0x96b   :  { %v872_v12 = vpop.f32.mrb[30].mxu1 }
 0x96c   :  { %v1761_v15 = vpop.f32.mrb[31].mxu1  ;;  %1771 = vmatmul.mubr.msk.bf16.vlgmr.msra.gmra.mrb[32].mxu1 %vm144_vm2, %v923_v9 }
 0x96d   :  { %1781 = vmatpush3.bf16.xpose.msra.mxu1 %v1033_v13  ;;  %1782 = vmatprep.mubr.msk.bf16.mxu1 %vm1951_vm0, %v1950_v0 }
 0x96e   :  { %1792 = vmatprep.subr.bf16.mxu1 %v1950_v0 }
 0x96f   :  { %v1019_v16 = vpop.f32.mrb[28].mxu0 }
 0x970   :  { %v1075_v17 = vmul.f32 0.35355338, %v1019_v16  ;;  %v1778_v18 = vpop.f32.mrb[29].mxu0 }
 0x971   :  { %v1022_v19 = vpop.f32.mrb[30].mxu0 }
 0x972   :  { %v1779_v21 = vpop.f32.mrb[31].mxu0  ;;  %v1077_v22 = vadd.f32 %v2108_v20, %v1075_v17 }
 0x974   :  { %1783 = vmatmul.mubr.msk.bf16.vlgmr.msra.gmra.mrb[36].mxu1 %vm144_vm2, %v1026_v23  ;;  %v1079_v24 = vsel %vm144_vm2, %v1077_v22, -inf }
 0x975   :  { %1080 = vmax.xlane.f32.xlu0 %v1079_v24  ;;  %1794 = vmatprep.mubr.msk.bf16.mxu1 %vm1951_vm0, %v1950_v0 }
 0xa02   :  { %v1081_v25 = vpop.xlane.xlu0 %1080 }
 0xa03   :  { %v1085_v26 = vsub.f32 %v1077_v22, %v1081_v25 }
 0xa05   :  { %v1087_v28 = vmul.f32 1.442695, %v1085_v26 }
 0xa07   :  { %1875 = vpow2.f32 %v1087_v28 }
 0xa11   :  { %v1876_v29 = vpop.eup %1875 }
 0xa12   :  { %v1091_v31 = vsel %vm144_vm2, %v1876_v29, 0.0 }
 0xa13   :  { %1092 = vadd.xlane.f32.xlu0 %v1091_v31 }
 0xa3f   :  { %v966_v32 = vpop.f32.mrb[32].mxu1 }
 0xa40   :  { %v973_v20 = vadd.f32 %v966_v32, %v2216_v30  ;;  %v1772_v34 = vpop.f32.mrb[33].mxu1 }
 0xa41   :  { %v969_v35 = vpop.f32.mrb[34].mxu1  ;;  %v1845_v34 = vld [vmem:[#allocation2] sm:$0xff]  }
 0xa42   :  { %v2259_v36 = vadd.f32 %v969_v35, %v2218_v33  ;;  %v1773_v37 = vpop.f32.mrb[35].mxu1 }
 0xa47   :  { %v1069_v38 = vpop.f32.mrb[36].mxu1 }
 0xa48   :  { %v1076_v39 = vmul.f32 0.35355338, %v1069_v38  ;;  %v1784_v40 = vpop.f32.mrb[37].mxu1 }
 0xa49   :  { %v1072_v41 = vpop.f32.mrb[38].mxu1 }
 0xa4a   :  { %v1785_v42 = vpop.f32.mrb[39].mxu1  ;;  %v1078_v43 = vadd.f32 %v2114_v27, %v1076_v39 }
 0xa4b   :  { %v1609_v42 = vld [vmem:[%s2361_s6] ss:$0 sm:$0xff] }
 0xa4c   :  { %v1082_v44 = vsel %vm144_vm2, %v1078_v43, -inf }
 0xa4d   :  { %1083 = vmax.xlane.f32.xlu1 %v1082_v44 }
 0xa5e   :  { %1103 = vrot.lane.b32.xlu1 %v2087_v11, %s1961_s2 }
 0xaa0   :  { %v1093_v30 = vpop.xlane.xlu0 %1092 }
 0xaa1   :  { %1877 = vrcp.f32 %v1093_v30 }
 0xaab   :  { %v1878_v45 = vpop.eup %1877 }
 0xaac   :  { %v1099_v47 = vmul.f32 %v1878_v45, %v1876_v29 }
 0xaae   :  { %v1101_v51 = vpack.c.bf16 %v1099_v47, %v1099_v47 }
 0xada   :  { %v1084_v46 = vpop.xlane.xlu1 %1083 }
 0xadb   :  { %v1086_v33 = vsub.f32 %v1078_v43, %v1084_v46  ;;  %v1610_v46 = vld [vmem:[%s2362_s7] ss:$0 sm:$0xff] }
 0xadd   :  { %v1089_v48 = vmul.f32 1.442695, %v1086_v33 }
 0xade   :  { %v1104_v49 = vpop.permute.xlu1 %1103 }
 0xadf   :  { %1879 = vpow2.f32 %v1089_v48  ;;  %v1109_v50 = vsel %vm284_vm3, %v1104_v49, 0 }
 0xae0   :  { %1787 = vmatpush3.bf16.msra.mxu0 %v1109_v50  ;;  %v1847_v50 = vld [vmem:[%s2365_s10] sm:$0xff]  }
 0xae1   :  { %1798 = vmatprep.subr.bf16.mxu0 %v1950_v0 }
 0xae3   :  { %1789 = vmatmul.mubr.msk.bf16.vlgmr.msra.gmra.mrb[32].mxu0 %vm144_vm2, %v1101_v51  ;;  %v1848_v51 = vld [vmem:[%s2365_s10 + $0x8] sm:$0xff]  }
 0xae4   :  { %1800 = vmatprep.mubr.msk.bf16.mxu0 %vm1951_vm0, %v1950_v0  ;;  %1799 = vmatpush3.bf16.msra.mxu0 %v1206_v53 }
 0xae5   :  { %1812 = vmatprep.subr.bf16.mxu0 %v1950_v0 }
 0xae9   :  { %v1880_v11 = vpop.eup %1879 }
 0xaea   :  { %v1094_v27 = vsel %vm144_vm2, %v1880_v11, 0.0 }
 0xaeb   :  { %1095 = vadd.xlane.f32.xlu0 %v1094_v27  ;;  %v1850_v27 = vld [vmem:[%s2365_s10 + $0x18] sm:$0xff]  }
 0xb01   :  { %1151 = vrot.lane.b32.xlu0 %v2090_v14, %s1961_s2 }
 0xb78   :  { %v1096_v54 = vpop.xlane.xlu0 %1095 }
 0xb79   :  { %1881 = vrcp.f32 %v1096_v54 }
 0xb7c   :  { %v1152_v55 = vpop.permute.xlu0 %1151 }
 0xb7d   :  { %v1157_v56 = vsel %vm284_vm3, %v1152_v55, 0 }
 0xb7e   :  { %1793 = vmatpush3.bf16.msra.mxu1 %v1157_v56 }
 0xb7f   :  { %1804 = vmatprep.subr.bf16.mxu1 %v1950_v0 }
 0xb83   :  { %v1882_v57 = vpop.eup %1881 }
 0xb84   :  { %v1100_v58 = vmul.f32 %v1882_v57, %v1880_v11  ;;  %v1849_v11 = vld [vmem:[%s2365_s10 + $0x10] sm:$0xff]  }
 0xb86   :  { %v1102_v14 = vpack.c.bf16 %v1100_v58, %v1100_v58 }
 0xb88   :  { %1795 = vmatmul.mubr.msk.bf16.vlgmr.msra.gmra.mrb[40].mxu1 %vm144_vm2, %v1102_v14 }
 0xb89   :  { %1808 = vmatprep.mubr.msk.bf16.mxu1 %vm1951_vm0, %v1950_v0  ;;  %1805 = vmatpush3.bf16.msra.mxu1 %v1845_v34 }
 0xb8a   :  { %1806 = vmatprep.subr.bf16.mxu1 %v1950_v0 }
 0xbb6   :  { %v1145_v59 = vpop.f32.mrb[32].mxu0 }
 0xbb7   :  { %v1790_v60 = vpop.f32.mrb[33].mxu0 }
 0xbb8   :  { %v1148_v61 = vpop.f32.mrb[34].mxu0 }
 0xbb9   :  { %v1791_v62 = vpop.f32.mrb[35].mxu0 }
 0xc5b   :  { %v1193_v63 = vpop.f32.mrb[40].mxu1 }
 0xc5c   :  { %v1199_v1 = vpack.c.bf16 %v1193_v63, %v1145_v59  ;;  %v1796_v2 = vpop.f32.mrb[41].mxu1 }
 0xc5d   :  { %v1196_v5 = vpop.f32.mrb[42].mxu1 }
 0xc5e   :  { %v1797_v6 = vpop.f32.mrb[43].mxu1  ;;  %1801 = vmatmul.mubr.msk.bf16.vlgmr.msra.gmra.mrb[36].mxu0 %vm144_vm2, %v1199_v1 }
 0xc5f   :  { %1820 = vmatprep.mubr.msk.bf16.mxu0 %vm1951_vm0, %v1950_v0  ;;  %1813 = vmatpush3.bf16.msra.mxu0 %v1847_v50 }
 0xc60   :  { %1814 = vmatprep.subr.bf16.mxu0 %v1950_v0 }
 0xc63   :  { %1815 = vmatpush3.bf16.msra.mxu0 %v1848_v51  ;;  %v1615_v51 = vld [vmem:[%s2366_s11] ss:$0 sm:$0xff] }
 0xc64   :  { %1816 = vmatprep.subr.bf16.mxu0 %v1950_v0 }
 0xc67   :  { %1817 = vmatpush3.bf16.msra.mxu0 %v1849_v11 }
 0xc68   :  { %1818 = vmatprep.subr.bf16.mxu0 %v1950_v0 }
 0xc6b   :  { %1819 = vmatpush3.bf16.msra.mxu0 %v1850_v27 }
 0xd31   :  { %v1242_v7 = vpop.f32.mrb[36].mxu0 }
 0xd32   :  { %v1249_v9 = vadd.f32 %v1242_v7, %v973_v20  ;;  %v1802_v10 = vpop.f32.mrb[37].mxu0 }
 0xd33   :  { %v1245_v12 = vpop.f32.mrb[38].mxu0 }
 0xd34   :  { %v1258_v13 = vadd.f32 %v1608_v8, %v1249_v9  ;;  %v1250_v15 = vadd.f32 %v1245_v12, %v2259_v36  ;;  %v1803_v16 = vpop.f32.mrb[39].mxu0 }
 0xd36   :  { %v1259_v17 = vadd.f32 %v1608_v8, %v1250_v15  ;;  %v1260_v18 = vadd.f32 %v1258_v13, %v2070_v3 }
 0xd38   :  { %v1264_v19 = vsel %vm91_vm1, %v1260_v18, 0.0  ;;  %v1261_v21 = vadd.f32 %v1259_v17, %v2075_v4  ;;  %v1846_v4 = vld [vmem:[#allocation2 + $0x8] sm:$0xff]  }
 0xd39   :  { %1265 = vadd.xlane.f32.xlu1 %v1264_v19  ;;  %1807 = vmatpush3.bf16.msra.mxu1 %v1846_v4 }
 0xd3a   :  { %v1267_v22 = vsel %vm91_vm1, %v1261_v21, 0.0 }
 0xd3b   :  { %1268 = vadd.xlane.f32.xlu0 %v1267_v22 }
 0xdc6   :  { %v1266_v23 = vpop.xlane.xlu1 %1265 }
 0xdc7   :  { %v1271_v24 = vmul.f32 0.03125, %v1266_v23 }
 0xdc8   :  { %v1269_v25 = vpop.xlane.xlu0 %1268 }
 0xdc9   :  { %v1273_v26 = vsub.f32 %v1260_v18, %v1271_v24  ;;  %v1272_v28 = vmul.f32 0.03125, %v1269_v25 }
 0xdcb   :  { %v1274_v29 = vsub.f32 %v1261_v21, %v1272_v28  ;;  %v1275_v31 = vmul.f32 %v1273_v26, %v1273_v26 }
 0xdcd   :  { %v1277_v32 = vsel %vm91_vm1, %v1275_v31, 0.0  ;;  %v1276_v20 = vmul.f32 %v1274_v29, %v1274_v29 }
 0xdce   :  { %1278 = vadd.xlane.f32.xlu1 %v1277_v32 }
 0xdcf   :  { %v1280_v3 = vsel %vm91_vm1, %v1276_v20, 0.0 }
 0xdd0   :  { %1281 = vadd.xlane.f32.xlu0 %v1280_v3 }
 0xe5b   :  { %v1279_v35 = vpop.xlane.xlu1 %1278 }
 0xe5c   :  { %v1283_v36 = vmul.f32 0.03125, %v1279_v35 }
 0xe5d   :  { %v1282_v37 = vpop.xlane.xlu0 %1281 }
 0xe5e   :  { %v1285_v38 = vadd.f32 1e-05, %v1283_v36  ;;  %v1284_v39 = vmul.f32 0.03125, %v1282_v37  ;;  %v1962_v37 = vmov -1.0  }
 0xe60   :  { %1883 = vrsqrt.f32 %v1285_v38  ;;  %v1286_v40 = vadd.f32 1e-05, %v1284_v39 }
 0xe62   :  { %1885 = vrsqrt.f32 %v1286_v40 }
 0xe6a   :  { %v1884_v41 = vpop.eup %1883 }
 0xe6b   :  { %v1289_v43 = vmul.f32 %v1884_v41, %v1273_v26 }
 0xe6c   :  { %v1886_v44 = vpop.eup %1885 }
 0xe6d   :  { %v1297_v30 = vmul.f32 %v1609_v42, %v1289_v43  ;;  %v1290_v45 = vmul.f32 %v1886_v44, %v1274_v29 }
 0xe6f   :  { %v1298_v33 = vmul.f32 %v1609_v42, %v1290_v45  ;;  %v2301_v47 = vadd.f32 %v1610_v46, %v1297_v30 }
 0xe71   :  { %v2303_v48 = vadd.f32 %v1610_v46, %v1298_v33 }
 0xe73   :  { %v1307_v49 = vpack.c.bf16 %v2303_v48, %v2301_v47 }
 0xe75   :  { %1809 = vmatmul.mubr.msk.bf16.vlgmr.msra.gmra.mrb[44].mxu1 %vm91_vm1, %v1307_v49 }
 0xf48   :  { %v1368_v53 = vpop.f32.mrb[44].mxu1 }
 0xf49   :  { %v1369_v54 = vadd.f32 %v1611_v52, %v1368_v53  ;;  %v1810_v55 = vpop.f32.mrb[45].mxu1 }
 0xf4a   :  { %v1371_v56 = vpop.f32.mrb[46].mxu1 }
 0xf4b   :  { %v1377_v57 = vmul.f32 0.70710677, %v1369_v54  ;;  %v1372_v58 = vadd.f32 %v1611_v52, %v1371_v56  ;;  %v1811_v14 = vpop.f32.mrb[47].mxu1  ;;  %v1375_v30 = vmul.f32 0.5, %v1369_v54 }
 0xf4d   :  { %v1383_v59 = vand.u32 2147483647, %v1377_v57  ;;  %v1378_v60 = vmul.f32 0.70710677, %v1372_v58  ;;  %vm1379_vm4 = vcmp.ge.f32.partialorder %v1377_v57, 0.0  ;;  %v1376_v45 = vmul.f32 0.5, %v1372_v58 }
 0xf4e   :  { %v1381_v38 = vsel %vm1379_vm4, 1.0, %v1962_v37 }
 0xf4f   :  { %v1385_v61 = vmul.f32 0.3275911, %v1383_v59  ;;  %v1384_v0 = vand.u32 2147483647, %v1378_v60  ;;  %v1409_v2 = vsub.f32 0.0, %v1383_v59  ;;  %vm1380_vm5 = vcmp.ge.f32.partialorder %v1378_v60, 0.0 }
 0xf50   :  { %v1382_v42 = vsel %vm1380_vm5, 1.0, %v1962_v37 }
 0xf51   :  { %v1387_v62 = vadd.f32 1.0, %v1385_v61  ;;  %v1386_v63 = vmul.f32 0.3275911, %v1384_v0  ;;  %v1410_v5 = vsub.f32 0.0, %v1384_v0  ;;  %v1411_v7 = vmul.f32 %v1409_v2, %v1383_v59 }
 0xf53   :  { %1887 = vrcp.f32 %v1387_v62  ;;  %v1388_v1 = vadd.f32 1.0, %v1386_v63  ;;  %v1412_v12 = vmul.f32 %v1410_v5, %v1384_v0  ;;  %v1413_v13 = vmul.f32 1.442695, %v1411_v7 }
 0xf55   :  { %1889 = vrcp.f32 %v1388_v1  ;;  %v1415_v19 = vmul.f32 1.442695, %v1412_v12 }
 0xf56   :  { %1891 = vpow2.f32 %v1413_v13  ;;  %v1621_v13 = vld [vmem:[%s2367_s12] ss:$0 sm:$0xff] }
 0xf57   :  { %1893 = vpow2.f32 %v1415_v19 }
 0xf5d   :  { %v1888_v6 = vpop.eup %1887 }
 0xf5e   :  { %v1391_v8 = vmul.f32 1.0614054, %v1888_v6 }
 0xf5f   :  { %v1890_v9 = vpop.eup %1889 }
 0xf60   :  { %v1393_v10 = vadd.f32 -1.4531521, %v1391_v8  ;;  %v1392_v15 = vmul.f32 1.0614054, %v1890_v9  ;;  %v1892_v20 = vpop.eup %1891 }
 0xf61   :  { %v1894_v35 = vpop.eup %1893 }
 0xf62   :  { %v1395_v16 = vmul.f32 %v1888_v6, %v1393_v10  ;;  %v1394_v17 = vadd.f32 -1.4531521, %v1392_v15 }
 0xf64   :  { %v1397_v18 = vadd.f32 1.4214138, %v1395_v16  ;;  %v1396_v21 = vmul.f32 %v1890_v9, %v1394_v17  ;;  %v1622_v17 = vld [vmem:[%s2368_s13] ss:$0 sm:$0xff] }
 0xf66   :  { %v1399_v22 = vmul.f32 %v1888_v6, %v1397_v18  ;;  %v1398_v23 = vadd.f32 1.4214138, %v1396_v21 }
 0xf68   :  { %v1401_v24 = vadd.f32 -0.28449672, %v1399_v22  ;;  %v1400_v25 = vmul.f32 %v1890_v9, %v1398_v23 }
 0xf6a   :  { %v1403_v26 = vmul.f32 %v1888_v6, %v1401_v24  ;;  %v1402_v28 = vadd.f32 -0.28449672, %v1400_v25 }
 0xf6c   :  { %v1405_v29 = vadd.f32 0.2548296, %v1403_v26  ;;  %v1404_v31 = vmul.f32 %v1890_v9, %v1402_v28 }
 0xf6e   :  { %v1407_v32 = vmul.f32 %v1888_v6, %v1405_v29  ;;  %v1406_v3 = vadd.f32 0.2548296, %v1404_v31 }
 0xf70   :  { %v1417_v34 = vmul.f32 %v1892_v20, %v1407_v32  ;;  %v1408_v4 = vmul.f32 %v1890_v9, %v1406_v3 }
 0xf72   :  { %v1419_v36 = vsub.f32 1.0, %v1417_v34  ;;  %v1418_v39 = vmul.f32 %v1894_v35, %v1408_v4 }
 0xf74   :  { %v1421_v40 = vmul.f32 %v1419_v36, %v1381_v38  ;;  %v1420_v41 = vsub.f32 1.0, %v1418_v39 }
 0xf76   :  { %v1423_v43 = vadd.f32 1.0, %v1421_v40  ;;  %v1422_v44 = vmul.f32 %v1420_v41, %v1382_v42 }
 0xf78   :  { %v1424_v46 = vadd.f32 1.0, %v1422_v44  ;;  %v1425_v33 = vmul.f32 %v1423_v43, %v1375_v30 }
 0xf7a   :  { %v1426_v49 = vmul.f32 %v1424_v46, %v1376_v45 }
 0xf7c   :  { %v1427_v50 = vpack.c.bf16 %v1426_v49, %v1425_v33 }
 0xf7e   :  { %1821 = vmatmul.mubr.msk.bf16.vlgmr.msra.gmra.mrb[40].mxu0 %vm1467_vm6, %v1427_v50 }
0x1051   :  { %v1505_v11 = vpop.f32.mrb[40].mxu0 }
0x1052   :  { %v1506_v27 = vadd.f32 %v1615_v51, %v1505_v11  ;;  %v1822_v52 = vpop.f32.mrb[41].mxu0 }
0x1053   :  { %v1508_v53 = vpop.f32.mrb[42].mxu0 }
0x1054   :  { %v1509_v55 = vadd.f32 %v1615_v51, %v1508_v53  ;;  %v1823_v56 = vpop.f32.mrb[43].mxu0  ;;  %v1512_v57 = vadd.f32 %v1506_v27, %v2301_v47 }
0x1056   :  { %v1516_v54 = vsel %vm91_vm1, %v1512_v57, 0.0  ;;  %v1513_v58 = vadd.f32 %v1509_v55, %v2303_v48 }
0x1057   :  { %1517 = vadd.xlane.f32.xlu1 %v1516_v54 }
0x1058   :  { %v1519_v14 = vsel %vm91_vm1, %v1513_v58, 0.0 }
0x1059   :  { %1520 = vadd.xlane.f32.xlu0 %v1519_v14 }
0x10e4   :  { %v1518_v59 = vpop.xlane.xlu1 %1517 }
0x10e5   :  { %v1522_v60 = vmul.f32 0.03125, %v1518_v59 }
0x10e6   :  { %v1521_v61 = vpop.xlane.xlu0 %1520 }
0x10e7   :  { %v1524_v0 = vsub.f32 %v1512_v57, %v1522_v60  ;;  %v1523_v62 = vmul.f32 0.03125, %v1521_v61 }
0x10e9   :  { %v1525_v63 = vsub.f32 %v1513_v58, %v1523_v62  ;;  %v1526_v1 = vmul.f32 %v1524_v0, %v1524_v0 }
0x10eb   :  { %v1528_v2 = vsel %vm91_vm1, %v1526_v1, 0.0  ;;  %v1527_v5 = vmul.f32 %v1525_v63, %v1525_v63 }
0x10ec   :  { %1529 = vadd.xlane.f32.xlu1 %v1528_v2 }
0x10ed   :  { %v1531_v47 = vsel %vm91_vm1, %v1527_v5, 0.0 }
0x10ee   :  { %1532 = vadd.xlane.f32.xlu0 %v1531_v47 }
0x1179   :  { %v1530_v6 = vpop.xlane.xlu1 %1529 }
0x117a   :  { %v1534_v48 = vmul.f32 0.03125, %v1530_v6 }
0x117b   :  { %v1533_v7 = vpop.xlane.xlu0 %1532 }
0x117c   :  { %v1536_v8 = vadd.f32 1e-05, %v1534_v48  ;;  %v1535_v9 = vmul.f32 0.03125, %v1533_v7 }
0x117e   :  { %1895 = vrsqrt.f32 %v1536_v8  ;;  %v1537_v10 = vadd.f32 1e-05, %v1535_v9 }
0x1180   :  { %1897 = vrsqrt.f32 %v1537_v10 }
0x1188   :  { %v1896_v12 = vpop.eup %1895 }
0x1189   :  { %v1540_v15 = vmul.f32 %v1896_v12, %v1524_v0 }
0x118a   :  { %v1898_v16 = vpop.eup %1897 }
0x118b   :  { %v1548_v18 = vmul.f32 %v1621_v13, %v1540_v15  ;;  %v1541_v19 = vmul.f32 %v1898_v16, %v1525_v63 }
0x118d   :  { %v1549_v21 = vmul.f32 %v1621_v13, %v1541_v19  ;;  %v1556_v22 = vadd.f32 %v1622_v17, %v1548_v18 }
0x118f   :  { %v1557_v23 = vadd.f32 %v1622_v17, %v1549_v21  ;;  %1558 = vst.msk [vmem:[#allocation5] sm:$0xff] %vm91_vm1, %v1556_v22 }
0x1191   :  { %1559 = vst.msk [vmem:[#allocation5 + $0x8] sm:$0xff] %vm91_vm1, %v1557_v23 }
0x1192   :  { %1932 = shalt.err (!%p1929_p12)
}
0x1193   :  { %s1933_s2 = scalar_lea.hbm %s2369_s14, 256 }
0x1194   :  { %p1934_p13 = scmp.ne.s32.totalorder %s2369_s14, %s1933_s2  ;;  %p1937_p0 = scmp.lt.u32.totalorder %s1933_s2, %s2369_s14 }
0x1196   :  { %p1939_p1 = pnand %p1937_p0, %p1934_p13 }
0x1198   :  { %1942 = shalt.err (!%p1939_p1)
}
0x1199   :  { %s1964_s5 = smov 128   ;;  %s1965_s19 = smov 8  }
0x119a   :  { %1571 = dma.vmem_to_hbm [thread:$0]  %s1566_s16, 256, %s2369_s14, [#allocation4], %s1964_s5, %s1964_s5, %s1965_s19  }
0x119b   :  { %1945 = dma.done.wait [#allocation4], 256  }
0x119c   :  { %1946 = vsyncadd [#allocation4], 4294967040 }
0x119d   :  { %1575 = vsyncpa [#allocation3], 1 }
0x119e   :  { %1576 = vsyncpa [#allocation4], 1 }

</bundles_post_ra>
